<compile_context>
chip_gen: v7x
topology: tpu7x:2x2x1
jax: 0.10.0
libtpu: 0.0.40
codegen_flags: <defaults>
</compile_context>

<pallas_src>
import functools
import math

import jax
import jax.numpy as jnp
from jax import lax
from jax.experimental import pallas as pl
from jax.experimental.pallas import tpu as pltpu  # noqa: F401

# ---- small config (consistent with the module, scaled down) ----
VOCAB_SIZE = 65
VOCAB_PAD = 128          # lane-dense lm_head output (pad cols sliced off for user logits)
N_EMBD = 32
N_HEADS = 4
HEAD_SIZE = N_EMBD // N_HEADS
N_LAYER = 2
BLOCK_SIZE = 16          # max sequence length (pos-embedding table size)
EMB_ROWS = VOCAB_PAD + BLOCK_SIZE   # combined [token | pad | position] table
EPS = 1e-5               # PyTorch nn.LayerNorm default

# slab32 rows: per layer [ln1_g, ln1_b, bo, ln2_g, ln2_b, b2], then [lnf_g, lnf_b]
ROWS32 = 6 * N_LAYER + 2
# slab128 rows: b1 per layer, then b_lm
ROWS128 = N_LAYER + 1


def _layernorm(x, g, b):
    # one-pass statistics: var = E[x^2] - E[x]^2 (drops one dependent reduce chain)
    mu = jnp.mean(x, axis=-1, keepdims=True)
    m2 = jnp.mean(x * x, axis=-1, keepdims=True)
    var = m2 - mu * mu
    return (x - mu) * lax.rsqrt(var + EPS) * g + b


# ---------------- fully fused forward kernel ----------------
def gpt_kernel(B, T, idx_ref, emb_ref, s32_ref, s128_ref,
               wqkv_ref, wo_ref, w1_ref, w2_ref, wlm_ref, o_ref):
    C, H, hs = N_EMBD, N_HEADS, HEAD_SIZE
    M = B * T
    bf16 = jnp.bfloat16

    # ---- fused token + position embedding: one "two-hot" matmul ----
    idx_v = idx_ref[...]                                        # (M, 1) int32
    pos_v = lax.broadcasted_iota(jnp.int32, (M, 1), 0)
    if T & (T - 1) == 0:
        pos_v = pos_v & (T - 1)                                 # m % T, no divide
    else:
        pos_v = pos_v % T
    lane = lax.broadcasted_iota(jnp.int32, (M, EMB_ROWS), 1)
    two_hot = ((idx_v == lane).astype(jnp.float32)
               + ((pos_v + VOCAB_PAD) == lane).astype(jnp.float32))
    x = jnp.dot(two_hot, emb_ref[...],
                preferred_element_type=jnp.float32)             # (M, C) f32

    # small f32 params (read slabs once; static row slices)
    s32 = s32_ref[...]                                          # (ROWS32, C)
    s128 = s128_ref[...]                                        # (ROWS128, 128)

    # block-diagonal causal mask over the flattened B*T axis (no integer divide)
    row = lax.broadcasted_iota(jnp.int32, (M, M), 0)
    col = lax.broadcasted_iota(jnp.int32, (M, M), 1)
    if T & (T - 1) == 0:
        same = (row & ~(T - 1)) == (col & ~(T - 1))
    else:
        same = (row // T) == (col // T)
    valid = same & (col <= row)
    neg_mask = jnp.where(valid, 0.0, -1e30).astype(jnp.float32)[None]   # (1, M, M)

    for l in range(N_LAYER):                                    # static unroll
        r = 6 * l
        ln1_g, ln1_b = s32[r + 0:r + 1, :], s32[r + 1:r + 2, :]
        bo = s32[r + 2:r + 3, :]
        ln2_g, ln2_b = s32[r + 3:r + 4, :], s32[r + 4:r + 5, :]
        b2 = s32[r + 5:r + 6, :]
        b1 = s128[l:l + 1, :]                                   # (1, 4C=128)

        # ---- multi-head causal self-attention (pre-LN), head-batched ----
        xn = _layernorm(x, ln1_g, ln1_b).astype(bf16)           # (M, C)
        xb = jnp.broadcast_to(xn[None], (3 * H, M, C))          # (3H, M, C)
        wqkv = wqkv_ref[3 * H * l:3 * H * (l + 1)]              # (3H, C, hs) bf16
        # one batched QKV projection; 1/sqrt(hs) folded into the Q weights
        qkv = lax.dot_general(xb, wqkv, (((2,), (1,)), ((0,), (0,))),
                              preferred_element_type=jnp.float32)   # (3H, M, hs)
        qkv = qkv.astype(bf16)                                  # single cast
        q, k, v = qkv[:H], qkv[H:2 * H], qkv[2 * H:]            # leading-dim slices

        s = lax.dot_general(q, k, (((2,), (2,)), ((0,), (0,))),
                            preferred_element_type=jnp.float32)     # (H, M, M) f32
        s = s + neg_mask
        s = s - jnp.max(s, axis=-1, keepdims=True)
        p = jnp.exp(s)
        p = p * pl.reciprocal(jnp.sum(p, axis=-1, keepdims=True), approx=True)

        o = lax.dot_general(p.astype(bf16), v, (((2,), (1,)), ((0,), (0,))),
                            preferred_element_type=jnp.float32)     # (H, M, hs)

        # output projection without transposing heads back:
        # proj = sum_h o_h @ Wo_h  (batched matmul + cheap leading-axis sum)
        wo = wo_ref[H * l:H * (l + 1)]                          # (H, hs, C) bf16
        po = lax.dot_general(o.astype(bf16), wo, (((2,), (1,)), ((0,), (0,))),
                             preferred_element_type=jnp.float32)    # (H, M, C)
        x = x + jnp.sum(po, axis=0) + bo

        # ---- feed-forward (pre-LN) ----
        xn2 = _layernorm(x, ln2_g, ln2_b).astype(bf16)
        h1 = jnp.dot(xn2, w1_ref[l], preferred_element_type=jnp.float32) + b1
        h1 = jnp.maximum(h1, 0.0)                               # ReLU
        h2 = jnp.dot(h1.astype(bf16), w2_ref[l],
                     preferred_element_type=jnp.float32) + b2
        x = x + h2

    # ---- final LayerNorm + lm_head (vocab padded to 128 lanes) ----
    lnf_g = s32[6 * N_LAYER + 0:6 * N_LAYER + 1, :]
    lnf_b = s32[6 * N_LAYER + 1:6 * N_LAYER + 2, :]
    b_lm = s128[N_LAYER:N_LAYER + 1, :]                         # pad cols = -1e30
    xn = _layernorm(x, lnf_g, lnf_b).astype(bf16)
    o_ref[...] = jnp.dot(xn, wlm_ref[...],
                         preferred_element_type=jnp.float32) + b_lm


def gpt_pallas(idx_flat, params, B, T):
    M = B * T
    kernel = functools.partial(gpt_kernel, B, T)
    # Single grid point; all weights + activations (few hundred KiB) live in
    # VMEM on every TPU generation — no grid, no extra buffering, no vmem tuning.
    return pl.pallas_call(
        kernel,
        out_shape=jax.ShapeDtypeStruct((M, VOCAB_PAD), jnp.float32),
    )(idx_flat, params["emb"], params["slab32"], params["slab128"],
      params["wqkv"], params["wo"], params["w1"], params["w2"], params["w_lm"])


# ---------------- parameter init (deterministic, synthetic) ----------------
def init_params(key):
    C, L, H, hs = N_EMBD, N_LAYER, N_HEADS, HEAD_SIZE

    def nrm(k, shape, scale=0.02):
        return (scale * jax.random.normal(k, shape)).astype(jnp.float32)

    keys = iter(jax.random.split(key, 8))

    # combined embedding table: rows [0,65) token, [65,128) zero pad, [128,144) position
    emb = jnp.zeros((EMB_ROWS, C), jnp.float32)
    emb = emb.at[:VOCAB_SIZE].set(nrm(next(keys), (VOCAB_SIZE, C)))
    emb = emb.at[VOCAB_PAD:].set(nrm(next(keys), (BLOCK_SIZE, C)))

    # per-head QKV weights, layout (L*3H, C, hs); fold 1/sqrt(hs) into Q heads
    wqkv = nrm(next(keys), (L, 3, H, C, hs))
    wqkv = wqkv.at[:, 0].multiply(1.0 / math.sqrt(hs))
    wqkv = wqkv.reshape(L * 3 * H, C, hs)

    # output projection, per-head layout (L*H, hs, C)
    wo = nrm(next(keys), (L * H, hs, C))

    w1 = nrm(next(keys), (L, C, 4 * C))
    w2 = nrm(next(keys), (L, 4 * C, C))

    # lm_head padded 65 -> 128: zero weights on pad cols, -1e30 bias on pad cols
    # so logsumexp over the padded logits equals the true logsumexp.
    w_lm = jnp.zeros((C, VOCAB_PAD), jnp.float32)
    w_lm = w_lm.at[:, :VOCAB_SIZE].set(nrm(next(keys), (C, VOCAB_SIZE)))
    b_lm = jnp.full((VOCAB_PAD,), -1e30, jnp.float32).at[:VOCAB_SIZE].set(0.0)

    # pack tiny f32 params into two slabs (2 DMAs instead of ~12 tiny ones)
    slab32 = jnp.zeros((ROWS32, C), jnp.float32)
    for l in range(L):
        r = 6 * l
        slab32 = slab32.at[r + 0].set(1.0)          # ln1 gamma
        slab32 = slab32.at[r + 3].set(1.0)          # ln2 gamma
        # ln1_b, bo, ln2_b, b2 stay zero
    slab32 = slab32.at[6 * L + 0].set(1.0)          # lnf gamma; lnf beta stays zero

    slab128 = jnp.zeros((ROWS128, VOCAB_PAD), jnp.float32)   # b1 rows stay zero
    slab128 = slab128.at[L].set(b_lm)

    return {
        "emb": emb,
        "slab32": slab32,
        "slab128": slab128,
        "wqkv": wqkv.astype(jnp.bfloat16),
        "wo": wo.astype(jnp.bfloat16),
        "w1": w1.astype(jnp.bfloat16),
        "w2": w2.astype(jnp.bfloat16),
        "w_lm": w_lm.astype(jnp.bfloat16),
    }


def gpt_forward(idx, params, targets=None):
    B, T = idx.shape
    assert T <= BLOCK_SIZE
    M = B * T
    idx_flat = idx.reshape(M, 1).astype(jnp.int32)
    logits_pad = gpt_pallas(idx_flat, params, B, T)             # (M, 128) lane-dense
    logits = logits_pad[:, :VOCAB_SIZE].reshape(B, T, VOCAB_SIZE)  # user-visible only
    loss = None
    if targets is not None:
        # cross-entropy directly on the padded logits: pad bias = -1e30 -> exp() = 0
        lse = jax.nn.logsumexp(logits_pad, axis=-1)
        tgt = jnp.take_along_axis(logits_pad, targets.reshape(M, 1), axis=-1)[:, 0]
        loss = jnp.mean(lse - tgt)
    return logits, loss


if __name__ == "__main__":
    key = jax.random.PRNGKey(0)
    pkey, ikey, tkey = jax.random.split(key, 3)
    params = init_params(pkey)

    B, T = 2, 8
    idx = jax.random.randint(ikey, (B, T), 0, VOCAB_SIZE, dtype=jnp.int32)
    targets = jax.random.randint(tkey, (B, T), 0, VOCAB_SIZE, dtype=jnp.int32)

    logits, loss = gpt_forward(idx, params, targets)
    logits = jax.block_until_ready(logits)
    assert logits.shape == (B, T, VOCAB_SIZE)
    assert bool(jnp.all(jnp.isfinite(logits)))
    assert bool(jnp.isfinite(loss))
    print("KERNEL_OK")
</pallas_src>

<mosaic_0001>
module attributes {stable_mosaic.version = 11 : i64} {
  func.func @gpt_kernel(%arg0: memref<16x1xi32, #tpu.memory_space<vmem>>, %arg1: memref<144x32xf32, #tpu.memory_space<vmem>>, %arg2: memref<14x32xf32, #tpu.memory_space<vmem>>, %arg3: memref<3x128xf32, #tpu.memory_space<vmem>>, %arg4: memref<24x32x8xbf16, #tpu.memory_space<vmem>>, %arg5: memref<8x8x32xbf16, #tpu.memory_space<vmem>>, %arg6: memref<2x32x128xbf16, #tpu.memory_space<vmem>>, %arg7: memref<2x128x32xbf16, #tpu.memory_space<vmem>>, %arg8: memref<32x128xbf16, #tpu.memory_space<vmem>>, %arg9: memref<16x128xf32, #tpu.memory_space<vmem>>) attributes {dimension_semantics = [], scalar_prefetch = 0 : i64, scratch_operands = 0 : i64, tpu.core_type = #tpu.core_type<tc>} {
    %c0 = arith.constant 0 : index
    %c0_0 = arith.constant 0 : index
    %0 = vector.load %arg0[%c0, %c0_0] : memref<16x1xi32, #tpu.memory_space<vmem>>, vector<16x1xi32>
    %1 = tpu.iota {dimensions = array<i32: 0>} : vector<16x1xi32>
    %c7_i32 = arith.constant 7 : i32
    %2 = vector.broadcast %c7_i32 : i32 to vector<16x1xi32>
    %3 = arith.andi %1, %2 : vector<16x1xi32>
    %4 = tpu.iota {dimensions = array<i32: 1>} : vector<16x144xi32>
    %5 = vector.broadcast %0 : vector<16x1xi32> to vector<16x144xi32>
    %6 = arith.cmpi eq, %5, %4 : vector<16x144xi32>
    %7 = arith.extui %6 : vector<16x144xi1> to vector<16x144xi32>
    %8 = arith.sitofp %7 : vector<16x144xi32> to vector<16x144xf32>
    %c128_i32 = arith.constant 128 : i32
    %9 = vector.broadcast %c128_i32 : i32 to vector<16x1xi32>
    %10 = arith.addi %3, %9 : vector<16x1xi32>
    %11 = vector.broadcast %10 : vector<16x1xi32> to vector<16x144xi32>
    %12 = arith.cmpi eq, %11, %4 : vector<16x144xi32>
    %13 = arith.extui %12 : vector<16x144xi1> to vector<16x144xi32>
    %14 = arith.sitofp %13 : vector<16x144xi32> to vector<16x144xf32>
    %15 = arith.addf %8, %14 : vector<16x144xf32>
    %c0_1 = arith.constant 0 : index
    %c0_2 = arith.constant 0 : index
    %16 = vector.load %arg1[%c0_1, %c0_2] : memref<144x32xf32, #tpu.memory_space<vmem>>, vector<144x32xf32>
    %cst = arith.constant dense<0.000000e+00> : vector<16x32xf32>
    %17 = tpu.matmul %15, %16, %cst {dimension_numbers = #tpu.dot_dimension_numbers<[1], [0], [0], [1], [0, 0, 1, 1], [], []>} : vector<16x144xf32>, vector<144x32xf32>, vector<16x32xf32> -> vector<16x32xf32>
    %c0_3 = arith.constant 0 : index
    %c0_4 = arith.constant 0 : index
    %18 = vector.load %arg2[%c0_3, %c0_4] : memref<14x32xf32, #tpu.memory_space<vmem>>, vector<14x32xf32>
    %c0_5 = arith.constant 0 : index
    %c0_6 = arith.constant 0 : index
    %19 = vector.load %arg3[%c0_5, %c0_6] : memref<3x128xf32, #tpu.memory_space<vmem>>, vector<3x128xf32>
    %20 = tpu.iota {dimensions = array<i32: 0>} : vector<16x16xi32>
    %21 = tpu.iota {dimensions = array<i32: 1>} : vector<16x16xi32>
    %c-8_i32 = arith.constant -8 : i32
    %22 = vector.broadcast %c-8_i32 : i32 to vector<16x16xi32>
    %23 = arith.andi %20, %22 : vector<16x16xi32>
    %c-8_i32_7 = arith.constant -8 : i32
    %24 = vector.broadcast %c-8_i32_7 : i32 to vector<16x16xi32>
    %25 = arith.andi %21, %24 : vector<16x16xi32>
    %26 = arith.cmpi eq, %23, %25 : vector<16x16xi32>
    %27 = arith.cmpi sle, %21, %20 : vector<16x16xi32>
    %28 = arith.andi %26, %27 : vector<16x16xi1>
    %cst_8 = arith.constant 0.000000e+00 : f32
    %cst_9 = arith.constant -1.000000e+30 : f32
    %29 = vector.broadcast %cst_8 : f32 to vector<16x16xf32>
    %30 = vector.broadcast %cst_9 : f32 to vector<16x16xf32>
    %31 = arith.select %28, %29, %30 : vector<16x16xi1>, vector<16x16xf32>
    %32 = vector.shape_cast %31 : vector<16x16xf32> to vector<1x16x16xf32>
    %33 = vector.extract_strided_slice %18 {offsets = [0, 0], sizes = [1, 32], strides = [1, 1]} : vector<14x32xf32> to vector<1x32xf32>
    %34 = vector.extract_strided_slice %18 {offsets = [1, 0], sizes = [1, 32], strides = [1, 1]} : vector<14x32xf32> to vector<1x32xf32>
    %35 = vector.extract_strided_slice %18 {offsets = [2, 0], sizes = [1, 32], strides = [1, 1]} : vector<14x32xf32> to vector<1x32xf32>
    %36 = vector.extract_strided_slice %18 {offsets = [3, 0], sizes = [1, 32], strides = [1, 1]} : vector<14x32xf32> to vector<1x32xf32>
    %37 = vector.extract_strided_slice %18 {offsets = [4, 0], sizes = [1, 32], strides = [1, 1]} : vector<14x32xf32> to vector<1x32xf32>
    %38 = vector.extract_strided_slice %18 {offsets = [5, 0], sizes = [1, 32], strides = [1, 1]} : vector<14x32xf32> to vector<1x32xf32>
    %39 = vector.extract_strided_slice %19 {offsets = [0, 0], sizes = [1, 128], strides = [1, 1]} : vector<3x128xf32> to vector<1x128xf32>
    %cst_10 = arith.constant dense<0.000000e+00> : vector<16xf32>
    %40 = vector.multi_reduction <add>, %17, %cst_10 [1] : vector<16x32xf32> to vector<16xf32>
    %41 = vector.shape_cast %40 : vector<16xf32> to vector<16x1xf32>
    %cst_11 = arith.constant 3.200000e+01 : f32
    %42 = vector.broadcast %cst_11 : f32 to vector<16x1xf32>
    %43 = arith.divf %41, %42 : vector<16x1xf32>
    %44 = arith.mulf %17, %17 : vector<16x32xf32>
    %cst_12 = arith.constant dense<0.000000e+00> : vector<16xf32>
    %45 = vector.multi_reduction <add>, %44, %cst_12 [1] : vector<16x32xf32> to vector<16xf32>
    %46 = vector.shape_cast %45 : vector<16xf32> to vector<16x1xf32>
    %cst_13 = arith.constant 3.200000e+01 : f32
    %47 = vector.broadcast %cst_13 : f32 to vector<16x1xf32>
    %48 = arith.divf %46, %47 : vector<16x1xf32>
    %49 = arith.mulf %43, %43 : vector<16x1xf32>
    %50 = arith.subf %48, %49 : vector<16x1xf32>
    %51 = vector.broadcast %43 : vector<16x1xf32> to vector<16x32xf32>
    %52 = arith.subf %17, %51 : vector<16x32xf32>
    %cst_14 = arith.constant 9.99999974E-6 : f32
    %53 = vector.broadcast %cst_14 : f32 to vector<16x1xf32>
    %54 = arith.addf %50, %53 : vector<16x1xf32>
    %55 = math.rsqrt %54 : vector<16x1xf32>
    %56 = vector.broadcast %55 : vector<16x1xf32> to vector<16x32xf32>
    %57 = arith.mulf %52, %56 : vector<16x32xf32>
    %58 = vector.broadcast %33 : vector<1x32xf32> to vector<16x32xf32>
    %59 = arith.mulf %57, %58 : vector<16x32xf32>
    %60 = vector.broadcast %34 : vector<1x32xf32> to vector<16x32xf32>
    %61 = arith.addf %59, %60 : vector<16x32xf32>
    %62 = arith.truncf %61 : vector<16x32xf32> to vector<16x32xbf16>
    %63 = vector.shape_cast %62 : vector<16x32xbf16> to vector<1x16x32xbf16>
    %64 = vector.shape_cast %63 : vector<1x16x32xbf16> to vector<1x16x32xbf16>
    %65 = vector.broadcast %64 : vector<1x16x32xbf16> to vector<12x16x32xbf16>
    %c0_15 = arith.constant 0 : index
    %c0_16 = arith.constant 0 : index
    %c0_17 = arith.constant 0 : index
    %66 = vector.load %arg4[%c0_15, %c0_16, %c0_17] : memref<24x32x8xbf16, #tpu.memory_space<vmem>>, vector<12x32x8xbf16>
    %cst_18 = arith.constant dense<0.000000e+00> : vector<12x16x8xf32>
    %67 = tpu.matmul %65, %66, %cst_18 {dimension_numbers = #tpu.dot_dimension_numbers<[2], [1], [1], [2], [0, 0, 0, 1, 1, 2], [0], [0]>} : vector<12x16x32xbf16>, vector<12x32x8xbf16>, vector<12x16x8xf32> -> vector<12x16x8xf32>
    %68 = arith.truncf %67 : vector<12x16x8xf32> to vector<12x16x8xbf16>
    %69 = vector.extract_strided_slice %68 {offsets = [0, 0, 0], sizes = [4, 16, 8], strides = [1, 1, 1]} : vector<12x16x8xbf16> to vector<4x16x8xbf16>
    %70 = vector.extract_strided_slice %68 {offsets = [4, 0, 0], sizes = [4, 16, 8], strides = [1, 1, 1]} : vector<12x16x8xbf16> to vector<4x16x8xbf16>
    %71 = vector.extract_strided_slice %68 {offsets = [8, 0, 0], sizes = [4, 16, 8], strides = [1, 1, 1]} : vector<12x16x8xbf16> to vector<4x16x8xbf16>
    %cst_19 = arith.constant dense<0.000000e+00> : vector<4x16x16xf32>
    %72 = tpu.matmul %69, %70, %cst_19 {dimension_numbers = #tpu.dot_dimension_numbers<[2], [2], [1], [1], [0, 0, 0, 1, 1, 1], [0], [0]>} : vector<4x16x8xbf16>, vector<4x16x8xbf16>, vector<4x16x16xf32> -> vector<4x16x16xf32>
    %73 = vector.broadcast %32 : vector<1x16x16xf32> to vector<4x16x16xf32>
    %74 = arith.addf %72, %73 : vector<4x16x16xf32>
    %cst_20 = arith.constant dense<0xFF800000> : vector<4x16xf32>
    %75 = vector.multi_reduction <maximumf>, %74, %cst_20 [2] : vector<4x16x16xf32> to vector<4x16xf32>
    %76 = vector.shape_cast %75 : vector<4x16xf32> to vector<4x16x1xf32>
    %77 = vector.broadcast %76 : vector<4x16x1xf32> to vector<4x16x16xf32>
    %78 = arith.subf %74, %77 : vector<4x16x16xf32>
    %79 = math.exp %78 : vector<4x16x16xf32>
    %cst_21 = arith.constant dense<0.000000e+00> : vector<4x16xf32>
    %80 = vector.multi_reduction <add>, %79, %cst_21 [2] : vector<4x16x16xf32> to vector<4x16xf32>
    %81 = vector.shape_cast %80 : vector<4x16xf32> to vector<4x16x1xf32>
    %82 = tpu.reciprocal %81 {approx = true} : vector<4x16x1xf32> -> vector<4x16x1xf32>
    %83 = vector.broadcast %82 : vector<4x16x1xf32> to vector<4x16x16xf32>
    %84 = arith.mulf %79, %83 : vector<4x16x16xf32>
    %85 = arith.truncf %84 : vector<4x16x16xf32> to vector<4x16x16xbf16>
    %cst_22 = arith.constant dense<0.000000e+00> : vector<4x16x8xf32>
    %86 = tpu.matmul %85, %71, %cst_22 {dimension_numbers = #tpu.dot_dimension_numbers<[2], [1], [1], [2], [0, 0, 0, 1, 1, 2], [0], [0]>} : vector<4x16x16xbf16>, vector<4x16x8xbf16>, vector<4x16x8xf32> -> vector<4x16x8xf32>
    %c0_23 = arith.constant 0 : index
    %c0_24 = arith.constant 0 : index
    %c0_25 = arith.constant 0 : index
    %87 = vector.load %arg5[%c0_23, %c0_24, %c0_25] : memref<8x8x32xbf16, #tpu.memory_space<vmem>>, vector<4x8x32xbf16>
    %88 = arith.truncf %86 : vector<4x16x8xf32> to vector<4x16x8xbf16>
    %cst_26 = arith.constant dense<0.000000e+00> : vector<4x16x32xf32>
    %89 = tpu.matmul %88, %87, %cst_26 {dimension_numbers = #tpu.dot_dimension_numbers<[2], [1], [1], [2], [0, 0, 0, 1, 1, 2], [0], [0]>} : vector<4x16x8xbf16>, vector<4x8x32xbf16>, vector<4x16x32xf32> -> vector<4x16x32xf32>
    %cst_27 = arith.constant dense<0.000000e+00> : vector<16x32xf32>
    %90 = vector.multi_reduction <add>, %89, %cst_27 [0] : vector<4x16x32xf32> to vector<16x32xf32>
    %91 = arith.addf %17, %90 : vector<16x32xf32>
    %92 = vector.broadcast %35 : vector<1x32xf32> to vector<16x32xf32>
    %93 = arith.addf %91, %92 : vector<16x32xf32>
    %cst_28 = arith.constant dense<0.000000e+00> : vector<16xf32>
    %94 = vector.multi_reduction <add>, %93, %cst_28 [1] : vector<16x32xf32> to vector<16xf32>
    %95 = vector.shape_cast %94 : vector<16xf32> to vector<16x1xf32>
    %cst_29 = arith.constant 3.200000e+01 : f32
    %96 = vector.broadcast %cst_29 : f32 to vector<16x1xf32>
    %97 = arith.divf %95, %96 : vector<16x1xf32>
    %98 = arith.mulf %93, %93 : vector<16x32xf32>
    %cst_30 = arith.constant dense<0.000000e+00> : vector<16xf32>
    %99 = vector.multi_reduction <add>, %98, %cst_30 [1] : vector<16x32xf32> to vector<16xf32>
    %100 = vector.shape_cast %99 : vector<16xf32> to vector<16x1xf32>
    %cst_31 = arith.constant 3.200000e+01 : f32
    %101 = vector.broadcast %cst_31 : f32 to vector<16x1xf32>
    %102 = arith.divf %100, %101 : vector<16x1xf32>
    %103 = arith.mulf %97, %97 : vector<16x1xf32>
    %104 = arith.subf %102, %103 : vector<16x1xf32>
    %105 = vector.broadcast %97 : vector<16x1xf32> to vector<16x32xf32>
    %106 = arith.subf %93, %105 : vector<16x32xf32>
    %cst_32 = arith.constant 9.99999974E-6 : f32
    %107 = vector.broadcast %cst_32 : f32 to vector<16x1xf32>
    %108 = arith.addf %104, %107 : vector<16x1xf32>
    %109 = math.rsqrt %108 : vector<16x1xf32>
    %110 = vector.broadcast %109 : vector<16x1xf32> to vector<16x32xf32>
    %111 = arith.mulf %106, %110 : vector<16x32xf32>
    %112 = vector.broadcast %36 : vector<1x32xf32> to vector<16x32xf32>
    %113 = arith.mulf %111, %112 : vector<16x32xf32>
    %114 = vector.broadcast %37 : vector<1x32xf32> to vector<16x32xf32>
    %115 = arith.addf %113, %114 : vector<16x32xf32>
    %116 = arith.truncf %115 : vector<16x32xf32> to vector<16x32xbf16>
    %c0_33 = arith.constant 0 : index
    %c0_34 = arith.constant 0 : index
    %c0_35 = arith.constant 0 : index
    %117 = vector.load %arg6[%c0_33, %c0_34, %c0_35] : memref<2x32x128xbf16, #tpu.memory_space<vmem>>, vector<1x32x128xbf16>
    %118 = vector.shape_cast %117 : vector<1x32x128xbf16> to vector<32x128xbf16>
    %cst_36 = arith.constant dense<0.000000e+00> : vector<16x128xf32>
    %119 = tpu.matmul %116, %118, %cst_36 {dimension_numbers = #tpu.dot_dimension_numbers<[1], [0], [0], [1], [0, 0, 1, 1], [], []>} : vector<16x32xbf16>, vector<32x128xbf16>, vector<16x128xf32> -> vector<16x128xf32>
    %120 = vector.broadcast %39 : vector<1x128xf32> to vector<16x128xf32>
    %121 = arith.addf %119, %120 : vector<16x128xf32>
    %cst_37 = arith.constant 0.000000e+00 : f32
    %122 = vector.broadcast %cst_37 : f32 to vector<16x128xf32>
    %123 = arith.maximumf %121, %122 : vector<16x128xf32>
    %124 = arith.truncf %123 : vector<16x128xf32> to vector<16x128xbf16>
    %c0_38 = arith.constant 0 : index
    %c0_39 = arith.constant 0 : index
    %c0_40 = arith.constant 0 : index
    %125 = vector.load %arg7[%c0_38, %c0_39, %c0_40] : memref<2x128x32xbf16, #tpu.memory_space<vmem>>, vector<1x128x32xbf16>
    %126 = vector.shape_cast %125 : vector<1x128x32xbf16> to vector<128x32xbf16>
    %cst_41 = arith.constant dense<0.000000e+00> : vector<16x32xf32>
    %127 = tpu.matmul %124, %126, %cst_41 {dimension_numbers = #tpu.dot_dimension_numbers<[1], [0], [0], [1], [0, 0, 1, 1], [], []>} : vector<16x128xbf16>, vector<128x32xbf16>, vector<16x32xf32> -> vector<16x32xf32>
    %128 = vector.broadcast %38 : vector<1x32xf32> to vector<16x32xf32>
    %129 = arith.addf %127, %128 : vector<16x32xf32>
    %130 = arith.addf %93, %129 : vector<16x32xf32>
    %131 = vector.extract_strided_slice %18 {offsets = [6, 0], sizes = [1, 32], strides = [1, 1]} : vector<14x32xf32> to vector<1x32xf32>
    %132 = vector.extract_strided_slice %18 {offsets = [7, 0], sizes = [1, 32], strides = [1, 1]} : vector<14x32xf32> to vector<1x32xf32>
    %133 = vector.extract_strided_slice %18 {offsets = [8, 0], sizes = [1, 32], strides = [1, 1]} : vector<14x32xf32> to vector<1x32xf32>
    %134 = vector.extract_strided_slice %18 {offsets = [9, 0], sizes = [1, 32], strides = [1, 1]} : vector<14x32xf32> to vector<1x32xf32>
    %135 = vector.extract_strided_slice %18 {offsets = [10, 0], sizes = [1, 32], strides = [1, 1]} : vector<14x32xf32> to vector<1x32xf32>
    %136 = vector.extract_strided_slice %18 {offsets = [11, 0], sizes = [1, 32], strides = [1, 1]} : vector<14x32xf32> to vector<1x32xf32>
    %137 = vector.extract_strided_slice %19 {offsets = [1, 0], sizes = [1, 128], strides = [1, 1]} : vector<3x128xf32> to vector<1x128xf32>
    %cst_42 = arith.constant dense<0.000000e+00> : vector<16xf32>
    %138 = vector.multi_reduction <add>, %130, %cst_42 [1] : vector<16x32xf32> to vector<16xf32>
    %139 = vector.shape_cast %138 : vector<16xf32> to vector<16x1xf32>
    %cst_43 = arith.constant 3.200000e+01 : f32
    %140 = vector.broadcast %cst_43 : f32 to vector<16x1xf32>
    %141 = arith.divf %139, %140 : vector<16x1xf32>
    %142 = arith.mulf %130, %130 : vector<16x32xf32>
    %cst_44 = arith.constant dense<0.000000e+00> : vector<16xf32>
    %143 = vector.multi_reduction <add>, %142, %cst_44 [1] : vector<16x32xf32> to vector<16xf32>
    %144 = vector.shape_cast %143 : vector<16xf32> to vector<16x1xf32>
    %cst_45 = arith.constant 3.200000e+01 : f32
    %145 = vector.broadcast %cst_45 : f32 to vector<16x1xf32>
    %146 = arith.divf %144, %145 : vector<16x1xf32>
    %147 = arith.mulf %141, %141 : vector<16x1xf32>
    %148 = arith.subf %146, %147 : vector<16x1xf32>
    %149 = vector.broadcast %141 : vector<16x1xf32> to vector<16x32xf32>
    %150 = arith.subf %130, %149 : vector<16x32xf32>
    %cst_46 = arith.constant 9.99999974E-6 : f32
    %151 = vector.broadcast %cst_46 : f32 to vector<16x1xf32>
    %152 = arith.addf %148, %151 : vector<16x1xf32>
    %153 = math.rsqrt %152 : vector<16x1xf32>
    %154 = vector.broadcast %153 : vector<16x1xf32> to vector<16x32xf32>
    %155 = arith.mulf %150, %154 : vector<16x32xf32>
    %156 = vector.broadcast %131 : vector<1x32xf32> to vector<16x32xf32>
    %157 = arith.mulf %155, %156 : vector<16x32xf32>
    %158 = vector.broadcast %132 : vector<1x32xf32> to vector<16x32xf32>
    %159 = arith.addf %157, %158 : vector<16x32xf32>
    %160 = arith.truncf %159 : vector<16x32xf32> to vector<16x32xbf16>
    %161 = vector.shape_cast %160 : vector<16x32xbf16> to vector<1x16x32xbf16>
    %162 = vector.shape_cast %161 : vector<1x16x32xbf16> to vector<1x16x32xbf16>
    %163 = vector.broadcast %162 : vector<1x16x32xbf16> to vector<12x16x32xbf16>
    %c12 = arith.constant 12 : index
    %c0_47 = arith.constant 0 : index
    %c0_48 = arith.constant 0 : index
    %164 = vector.load %arg4[%c12, %c0_47, %c0_48] : memref<24x32x8xbf16, #tpu.memory_space<vmem>>, vector<12x32x8xbf16>
    %cst_49 = arith.constant dense<0.000000e+00> : vector<12x16x8xf32>
    %165 = tpu.matmul %163, %164, %cst_49 {dimension_numbers = #tpu.dot_dimension_numbers<[2], [1], [1], [2], [0, 0, 0, 1, 1, 2], [0], [0]>} : vector<12x16x32xbf16>, vector<12x32x8xbf16>, vector<12x16x8xf32> -> vector<12x16x8xf32>
    %166 = arith.truncf %165 : vector<12x16x8xf32> to vector<12x16x8xbf16>
    %167 = vector.extract_strided_slice %166 {offsets = [0, 0, 0], sizes = [4, 16, 8], strides = [1, 1, 1]} : vector<12x16x8xbf16> to vector<4x16x8xbf16>
    %168 = vector.extract_strided_slice %166 {offsets = [4, 0, 0], sizes = [4, 16, 8], strides = [1, 1, 1]} : vector<12x16x8xbf16> to vector<4x16x8xbf16>
    %169 = vector.extract_strided_slice %166 {offsets = [8, 0, 0], sizes = [4, 16, 8], strides = [1, 1, 1]} : vector<12x16x8xbf16> to vector<4x16x8xbf16>
    %cst_50 = arith.constant dense<0.000000e+00> : vector<4x16x16xf32>
    %170 = tpu.matmul %167, %168, %cst_50 {dimension_numbers = #tpu.dot_dimension_numbers<[2], [2], [1], [1], [0, 0, 0, 1, 1, 1], [0], [0]>} : vector<4x16x8xbf16>, vector<4x16x8xbf16>, vector<4x16x16xf32> -> vector<4x16x16xf32>
    %171 = vector.broadcast %32 : vector<1x16x16xf32> to vector<4x16x16xf32>
    %172 = arith.addf %170, %171 : vector<4x16x16xf32>
    %cst_51 = arith.constant dense<0xFF800000> : vector<4x16xf32>
    %173 = vector.multi_reduction <maximumf>, %172, %cst_51 [2] : vector<4x16x16xf32> to vector<4x16xf32>
    %174 = vector.shape_cast %173 : vector<4x16xf32> to vector<4x16x1xf32>
    %175 = vector.broadcast %174 : vector<4x16x1xf32> to vector<4x16x16xf32>
    %176 = arith.subf %172, %175 : vector<4x16x16xf32>
    %177 = math.exp %176 : vector<4x16x16xf32>
    %cst_52 = arith.constant dense<0.000000e+00> : vector<4x16xf32>
    %178 = vector.multi_reduction <add>, %177, %cst_52 [2] : vector<4x16x16xf32> to vector<4x16xf32>
    %179 = vector.shape_cast %178 : vector<4x16xf32> to vector<4x16x1xf32>
    %180 = tpu.reciprocal %179 {approx = true} : vector<4x16x1xf32> -> vector<4x16x1xf32>
    %181 = vector.broadcast %180 : vector<4x16x1xf32> to vector<4x16x16xf32>
    %182 = arith.mulf %177, %181 : vector<4x16x16xf32>
    %183 = arith.truncf %182 : vector<4x16x16xf32> to vector<4x16x16xbf16>
    %cst_53 = arith.constant dense<0.000000e+00> : vector<4x16x8xf32>
    %184 = tpu.matmul %183, %169, %cst_53 {dimension_numbers = #tpu.dot_dimension_numbers<[2], [1], [1], [2], [0, 0, 0, 1, 1, 2], [0], [0]>} : vector<4x16x16xbf16>, vector<4x16x8xbf16>, vector<4x16x8xf32> -> vector<4x16x8xf32>
    %c4 = arith.constant 4 : index
    %c0_54 = arith.constant 0 : index
    %c0_55 = arith.constant 0 : index
    %185 = vector.load %arg5[%c4, %c0_54, %c0_55] : memref<8x8x32xbf16, #tpu.memory_space<vmem>>, vector<4x8x32xbf16>
    %186 = arith.truncf %184 : vector<4x16x8xf32> to vector<4x16x8xbf16>
    %cst_56 = arith.constant dense<0.000000e+00> : vector<4x16x32xf32>
    %187 = tpu.matmul %186, %185, %cst_56 {dimension_numbers = #tpu.dot_dimension_numbers<[2], [1], [1], [2], [0, 0, 0, 1, 1, 2], [0], [0]>} : vector<4x16x8xbf16>, vector<4x8x32xbf16>, vector<4x16x32xf32> -> vector<4x16x32xf32>
    %cst_57 = arith.constant dense<0.000000e+00> : vector<16x32xf32>
    %188 = vector.multi_reduction <add>, %187, %cst_57 [0] : vector<4x16x32xf32> to vector<16x32xf32>
    %189 = arith.addf %130, %188 : vector<16x32xf32>
    %190 = vector.broadcast %133 : vector<1x32xf32> to vector<16x32xf32>
    %191 = arith.addf %189, %190 : vector<16x32xf32>
    %cst_58 = arith.constant dense<0.000000e+00> : vector<16xf32>
    %192 = vector.multi_reduction <add>, %191, %cst_58 [1] : vector<16x32xf32> to vector<16xf32>
    %193 = vector.shape_cast %192 : vector<16xf32> to vector<16x1xf32>
    %cst_59 = arith.constant 3.200000e+01 : f32
    %194 = vector.broadcast %cst_59 : f32 to vector<16x1xf32>
    %195 = arith.divf %193, %194 : vector<16x1xf32>
    %196 = arith.mulf %191, %191 : vector<16x32xf32>
    %cst_60 = arith.constant dense<0.000000e+00> : vector<16xf32>
    %197 = vector.multi_reduction <add>, %196, %cst_60 [1] : vector<16x32xf32> to vector<16xf32>
    %198 = vector.shape_cast %197 : vector<16xf32> to vector<16x1xf32>
    %cst_61 = arith.constant 3.200000e+01 : f32
    %199 = vector.broadcast %cst_61 : f32 to vector<16x1xf32>
    %200 = arith.divf %198, %199 : vector<16x1xf32>
    %201 = arith.mulf %195, %195 : vector<16x1xf32>
    %202 = arith.subf %200, %201 : vector<16x1xf32>
    %203 = vector.broadcast %195 : vector<16x1xf32> to vector<16x32xf32>
    %204 = arith.subf %191, %203 : vector<16x32xf32>
    %cst_62 = arith.constant 9.99999974E-6 : f32
    %205 = vector.broadcast %cst_62 : f32 to vector<16x1xf32>
    %206 = arith.addf %202, %205 : vector<16x1xf32>
    %207 = math.rsqrt %206 : vector<16x1xf32>
    %208 = vector.broadcast %207 : vector<16x1xf32> to vector<16x32xf32>
    %209 = arith.mulf %204, %208 : vector<16x32xf32>
    %210 = vector.broadcast %134 : vector<1x32xf32> to vector<16x32xf32>
    %211 = arith.mulf %209, %210 : vector<16x32xf32>
    %212 = vector.broadcast %135 : vector<1x32xf32> to vector<16x32xf32>
    %213 = arith.addf %211, %212 : vector<16x32xf32>
    %214 = arith.truncf %213 : vector<16x32xf32> to vector<16x32xbf16>
    %c1 = arith.constant 1 : index
    %c0_63 = arith.constant 0 : index
    %c0_64 = arith.constant 0 : index
    %215 = vector.load %arg6[%c1, %c0_63, %c0_64] : memref<2x32x128xbf16, #tpu.memory_space<vmem>>, vector<1x32x128xbf16>
    %216 = vector.shape_cast %215 : vector<1x32x128xbf16> to vector<32x128xbf16>
    %cst_65 = arith.constant dense<0.000000e+00> : vector<16x128xf32>
    %217 = tpu.matmul %214, %216, %cst_65 {dimension_numbers = #tpu.dot_dimension_numbers<[1], [0], [0], [1], [0, 0, 1, 1], [], []>} : vector<16x32xbf16>, vector<32x128xbf16>, vector<16x128xf32> -> vector<16x128xf32>
    %218 = vector.broadcast %137 : vector<1x128xf32> to vector<16x128xf32>
    %219 = arith.addf %217, %218 : vector<16x128xf32>
    %cst_66 = arith.constant 0.000000e+00 : f32
    %220 = vector.broadcast %cst_66 : f32 to vector<16x128xf32>
    %221 = arith.maximumf %219, %220 : vector<16x128xf32>
    %222 = arith.truncf %221 : vector<16x128xf32> to vector<16x128xbf16>
    %c1_67 = arith.constant 1 : index
    %c0_68 = arith.constant 0 : index
    %c0_69 = arith.constant 0 : index
    %223 = vector.load %arg7[%c1_67, %c0_68, %c0_69] : memref<2x128x32xbf16, #tpu.memory_space<vmem>>, vector<1x128x32xbf16>
    %224 = vector.shape_cast %223 : vector<1x128x32xbf16> to vector<128x32xbf16>
    %cst_70 = arith.constant dense<0.000000e+00> : vector<16x32xf32>
    %225 = tpu.matmul %222, %224, %cst_70 {dimension_numbers = #tpu.dot_dimension_numbers<[1], [0], [0], [1], [0, 0, 1, 1], [], []>} : vector<16x128xbf16>, vector<128x32xbf16>, vector<16x32xf32> -> vector<16x32xf32>
    %226 = vector.broadcast %136 : vector<1x32xf32> to vector<16x32xf32>
    %227 = arith.addf %225, %226 : vector<16x32xf32>
    %228 = arith.addf %191, %227 : vector<16x32xf32>
    %229 = vector.extract_strided_slice %18 {offsets = [12, 0], sizes = [1, 32], strides = [1, 1]} : vector<14x32xf32> to vector<1x32xf32>
    %230 = vector.extract_strided_slice %18 {offsets = [13, 0], sizes = [1, 32], strides = [1, 1]} : vector<14x32xf32> to vector<1x32xf32>
    %231 = vector.extract_strided_slice %19 {offsets = [2, 0], sizes = [1, 128], strides = [1, 1]} : vector<3x128xf32> to vector<1x128xf32>
    %cst_71 = arith.constant dense<0.000000e+00> : vector<16xf32>
    %232 = vector.multi_reduction <add>, %228, %cst_71 [1] : vector<16x32xf32> to vector<16xf32>
    %233 = vector.shape_cast %232 : vector<16xf32> to vector<16x1xf32>
    %cst_72 = arith.constant 3.200000e+01 : f32
    %234 = vector.broadcast %cst_72 : f32 to vector<16x1xf32>
    %235 = arith.divf %233, %234 : vector<16x1xf32>
    %236 = arith.mulf %228, %228 : vector<16x32xf32>
    %cst_73 = arith.constant dense<0.000000e+00> : vector<16xf32>
    %237 = vector.multi_reduction <add>, %236, %cst_73 [1] : vector<16x32xf32> to vector<16xf32>
    %238 = vector.shape_cast %237 : vector<16xf32> to vector<16x1xf32>
    %cst_74 = arith.constant 3.200000e+01 : f32
    %239 = vector.broadcast %cst_74 : f32 to vector<16x1xf32>
    %240 = arith.divf %238, %239 : vector<16x1xf32>
    %241 = arith.mulf %235, %235 : vector<16x1xf32>
    %242 = arith.subf %240, %241 : vector<16x1xf32>
    %243 = vector.broadcast %235 : vector<16x1xf32> to vector<16x32xf32>
    %244 = arith.subf %228, %243 : vector<16x32xf32>
    %cst_75 = arith.constant 9.99999974E-6 : f32
    %245 = vector.broadcast %cst_75 : f32 to vector<16x1xf32>
    %246 = arith.addf %242, %245 : vector<16x1xf32>
    %247 = math.rsqrt %246 : vector<16x1xf32>
    %248 = vector.broadcast %247 : vector<16x1xf32> to vector<16x32xf32>
    %249 = arith.mulf %244, %248 : vector<16x32xf32>
    %250 = vector.broadcast %229 : vector<1x32xf32> to vector<16x32xf32>
    %251 = arith.mulf %249, %250 : vector<16x32xf32>
    %252 = vector.broadcast %230 : vector<1x32xf32> to vector<16x32xf32>
    %253 = arith.addf %251, %252 : vector<16x32xf32>
    %254 = arith.truncf %253 : vector<16x32xf32> to vector<16x32xbf16>
    %c0_76 = arith.constant 0 : index
    %c0_77 = arith.constant 0 : index
    %255 = vector.load %arg8[%c0_76, %c0_77] : memref<32x128xbf16, #tpu.memory_space<vmem>>, vector<32x128xbf16>
    %cst_78 = arith.constant dense<0.000000e+00> : vector<16x128xf32>
    %256 = tpu.matmul %254, %255, %cst_78 {dimension_numbers = #tpu.dot_dimension_numbers<[1], [0], [0], [1], [0, 0, 1, 1], [], []>} : vector<16x32xbf16>, vector<32x128xbf16>, vector<16x128xf32> -> vector<16x128xf32>
    %257 = vector.broadcast %231 : vector<1x128xf32> to vector<16x128xf32>
    %258 = arith.addf %256, %257 : vector<16x128xf32>
    %c0_79 = arith.constant 0 : index
    %c0_80 = arith.constant 0 : index
    %259 = vector.load %arg9[%c0_79, %c0_80] : memref<16x128xf32, #tpu.memory_space<vmem>>, vector<16x128xf32>
    tpu.vector_store %arg9[%c0_79, %c0_80], %258 {strides = array<i32>} : memref<16x128xf32, #tpu.memory_space<vmem>>, vector<16x128xf32>,
    return
  }
}

</mosaic_0001>

<bundles_post_ra>
// kernel: tpu_custom_call.1
= control target key start
LH: loop header
LB: loop body
LE: loop exit
PB: predicated region body
PF: predicated region fallthrough
CT: control target
= control target key end

     0   :  { %v4568_v2 = vmov 0   ;;  %v4569_v3 = vmov 0.0|0.0   ;;  %v4570_v10 = vmov 0.0   ;;  %s5515_s0 = inlined_call_operand.vmem [shape: s32[16,1], index: 0, kind: input, shape index: {}]   ;;  %s5516_s1 = inlined_call_operand.vmem [shape: f32[144,32], index: 1, kind: input, shape index: {}]   ;;  %s5517_s2 = inlined_call_operand.vmem [shape: f32[14,32], index: 2, kind: input, shape index: {}]   ;;  %s5518_s3 = inlined_call_operand.vmem [shape: f32[3,128], index: 3, kind: input, shape index: {}]   ;;  %s5519_s4 = inlined_call_operand.vmem [shape: bf16[24,32,8], index: 4, kind: input, shape index: {}]   ;;  %s5520_s5 = inlined_call_operand.vmem [shape: bf16[8,8,32], index: 5, kind: input, shape index: {}]   ;;  %s5521_s6 = inlined_call_operand.vmem [shape: bf16[2,32,128], index: 6, kind: input, shape index: {}]   ;;  %s5522_s7 = inlined_call_operand.vmem [shape: bf16[2,128,32], index: 7, kind: input, shape index: {}]   ;;  %s5523_s8 = inlined_call_operand.vmem [shape: bf16[32,128], index: 8, kind: input, shape index: {}]   ;;  %s5524_s9 = inlined_call_operand.hbm [shape: f32[16,128], index: 9, kind: output, shape index: {}]  }
   0x1   :  { %v34_v0 = vld [vmem:[%s5515_s0] sm:$0xff]  ;;  %4387 = vset.pattern.permute.xlu0 %v4568_v2  ;;  %4351 = vmatprep.subr.bf16.mxu0 %v4569_v3  ;;  %v81_v4 = vld [vmem:[%s5516_s1 + $0x8] sm:$0xff]  ;;  %v82_v5 = vld [vmem:[%s5516_s1 + $0x10] sm:$0xff] }
   0x2   :  { %v80_v1 = vld [vmem:[%s5516_s1] sm:$0xff]  ;;  %v83_v6 = vld [vmem:[%s5516_s1 + $0x18] sm:$0xff]  ;;  %45 = vperm.xlu0 %4387, %v34_v0   ;;  %v35_v8 = vld [vmem:[%s5515_s0 + $0x8] sm:$0xff]  ;;  %3959 = vmatprep.subr.bf16.mxu1 %v4570_v10 }
   0x3   :  { %v4352_v7 = vpack.c.bf16 %v81_v4, %v80_v1  ;;  %v4355_v9 = vpack.c.bf16 %v83_v6, %v82_v5  ;;  %v84_v11 = vld [vmem:[%s5516_s1 + $0x20] sm:$0xff]  ;;  %v85_v12 = vld [vmem:[%s5516_s1 + $0x28] sm:$0xff]  ;;  %v86_v13 = vld [vmem:[%s5516_s1 + $0x30] sm:$0xff] }
   0x4   :  { %v4358_v14 = vpack.c.bf16 %v85_v12, %v84_v11  ;;  %v87_v15 = vld [vmem:[%s5516_s1 + $0x38] sm:$0xff]  ;;  %v88_v16 = vld [vmem:[%s5516_s1 + $0x40] sm:$0xff]  ;;  %v89_v17 = vld [vmem:[%s5516_s1 + $0x48] sm:$0xff] }
   0x5   :  { %4353 = vmatpush1.bf16.msra.mxu0 %v4352_v7  ;;  %v4361_v18 = vpack.c.bf16 %v87_v15, %v86_v13  ;;  %v90_v19 = vld [vmem:[%s5516_s1 + $0x50] sm:$0xff]  ;;  %v91_v20 = vld [vmem:[%s5516_s1 + $0x58] sm:$0xff]  ;;  %v4364_v21 = vpack.c.bf16 %v89_v17, %v88_v16  ;;  %v92_v22 = vld [vmem:[%s5516_s1 + $0x60] sm:$0xff] }
   0x6   :  { %4354 = vmatprep.subr.bf16.mxu0 %v4569_v3  ;;  %48 = vperm.xlu0 %4387, %v35_v8   ;;  %v93_v23 = vld [vmem:[%s5516_s1 + $0x68] sm:$0xff]  ;;  %v4367_v24 = vpack.c.bf16 %v91_v20, %v90_v19  ;;  %v94_v25 = vld [vmem:[%s5516_s1 + $0x70] sm:$0xff]  ;;  %v95_v26 = vld [vmem:[%s5516_s1 + $0x78] sm:$0xff] }
   0x7   :  { %v4370_v27 = vpack.c.bf16 %v93_v23, %v92_v22  ;;  %v96_v28 = vld [vmem:[%s5516_s1 + $0x80] sm:$0xff]  ;;  %v97_v29 = vld [vmem:[%s5516_s1 + $0x88] sm:$0xff]  ;;  %v4373_v30 = vpack.c.bf16 %v95_v26, %v94_v25 }
   0x8   :  { %v4376_v31 = vpack.c.bf16 %v97_v29, %v96_v28 }
   0x9   :  { %4356 = vmatpush1.bf16.msra.mxu0 %v4355_v9 }
   0xa   :  { %4357 = vmatprep.subr.bf16.mxu0 %v4569_v3 }
   0xd   :  { %4359 = vmatpush1.bf16.msra.mxu0 %v4358_v14 }
   0xe   :  { %4360 = vmatprep.subr.bf16.mxu0 %v4569_v3 }
  0x11   :  { %4362 = vmatpush1.bf16.msra.mxu0 %v4361_v18 }
  0x12   :  { %4363 = vmatprep.subr.bf16.mxu0 %v4569_v3 }
  0x15   :  { %4365 = vmatpush1.bf16.msra.mxu0 %v4364_v21 }
  0x16   :  { %4366 = vmatprep.subr.bf16.mxu0 %v4569_v3 }
  0x19   :  { %4368 = vmatpush1.bf16.msra.mxu0 %v4367_v24 }
  0x1a   :  { %4369 = vmatprep.subr.bf16.mxu0 %v4569_v3 }
  0x1d   :  { %4371 = vmatpush1.bf16.msra.mxu0 %v4370_v27 }
  0x1e   :  { %4372 = vmatprep.subr.bf16.mxu0 %v4569_v3 }
  0x21   :  { %4374 = vmatpush1.bf16.msra.mxu0 %v4373_v30 }
  0x22   :  { %4375 = vmatprep.subr.bf16.mxu0 %v4569_v3 }
  0x25   :  { %4377 = vmatpush1.bf16.msra.mxu0 %v4376_v31 }
  0x26   :  { %3951 = vmatprep.subr.bf16.mxu0 %v4570_v10 }
  0x27   :  { %14 = vsyncpa [#allocation3], 0  ;;  %v36_v32 = vlaneseq  ;;  %vm98_vm3 = vcmask 130048   ;;  %v4571_v48 = vmov 1.0   ;;  %vm194_vm7 = vcmask 261120   ;;  %v4388_v60 = vld [vmem:[%s5519_s4] sm:$0xff]  }
  0x28   :  { %v4389_v61 = vld [vmem:[%s5519_s4 + $0x10] sm:$0xff]   ;;  %v4390_v62 = vld [vmem:[%s5519_s4 + $0x8] sm:$0xff]   ;;  %v4391_v63 = vld [vmem:[%s5519_s4 + $0x18] sm:$0xff]   ;;  %vm4572_vm8 = vmmov 0   ;;  %vm938_vm9 = vcmask 64512  }
  0x29   :  { %v4689_v33 = vshrl.u32 %v36_v32, 7  ;;  %v4691_v34 = vand.u32 127, %v36_v32  ;;  %3960 = vmatpush3.bf16.msra.mxu1 %v4389_v61  ;;  %3963 = vmatprep.mubr.msk.bf16.mxu1 %vm4572_vm8, %v4570_v10  ;;  %v4747_v17 = vld [vmem:[%s5517_s2] sm:$0xff]  ;;  %v4393_v31 = vld [vmem:[%s5519_s4 + $0x50] sm:$0xff]  }
  0x2a   :  { %3961 = vmatprep.subr.bf16.mxu1 %v4570_v10  ;;  %v4392_v30 = vld [vmem:[%s5519_s4 + $0x20] sm:$0xff]  }
  0x2b   :  { %v4694_v35 = vadd.s32 8, %v4689_v33  ;;  %v39_v36 = vand.u32 7, %v4689_v33  ;;  %v43_v37 = vadd.s32 128, %v4691_v34  ;;  %v4742_v15 = vsub.s32 0, %v4689_v33 }
  0x2c   :  { %v4753_v20 = vsub.s32 1, %v4689_v33  ;;  %vm188_vm11 = vcmp.le.s32.totalorder %v4691_v34, %v4689_v33 }
  0x2d   :  { %v40_v38 = vand.u32 7, %v4694_v35  ;;  %v62_v39 = vadd.s32 128, %v39_v36  ;;  %3962 = vmatpush3.bf16.msra.mxu1 %v4391_v63  ;;  %v229_v19 = vrot.slane %v4747_v17, %v4742_v15  ;;  %v4394_v36 = vld [vmem:[%s5519_s4 + $0x28] sm:$0xff]   ;;  %vm189_vm12 = vcmp.le.s32.totalorder %v4691_v34, %v4694_v35 }
  0x2e   :  { %3967 = vmatprep.subr.bf16.mxu1 %v4570_v10  ;;  %v235_v24 = vrot.slane %v4747_v17, %v4753_v20 }
  0x2f   :  { %v63_v40 = vadd.s32 128, %v40_v38  ;;  %vm65_vm0 = vcmp.eq.s32.totalorder %v62_v39, %v43_v37  ;;  %v4396_v38 = vld [vmem:[%s5519_s4 + $0x30] sm:$0xff]  }
  0x30   :  { %v3605_v42 = vsel %vm65_vm0, 1.0, %v4570_v10  ;;  %v4397_v39 = vld [vmem:[%s5519_s4 + $0x70] sm:$0xff]   ;;  %vm1406_vm0 = vcmask 1043456  }
  0x31   :  { %vm67_vm2 = vcmp.eq.s32.totalorder %v63_v40, %v43_v37  ;;  %v4398_v40 = vld [vmem:[%s5519_s4 + $0x38] sm:$0xff]  }
  0x32   :  { %v3606_v45 = vsel %vm67_vm2, 1.0, %v4570_v10 }
  0x81   :  { %v46_v41 = vpop.permute.xlu0 %45 }
  0x82   :  { %vm51_vm1 = vcmp.eq.s32.totalorder %v46_v41, %v43_v37  ;;  %vm50_vm4 = vcmp.eq.s32.totalorder %v46_v41, %v4691_v34  ;;  %v4399_v41 = vld [vmem:[%s5519_s4 + $0x78] sm:$0xff]  }
  0x83   :  { %v3602_v43 = vsel %vm51_vm1, 1.0, %v4570_v10 }
  0x84   :  { %v77_v44 = vadd.f32 %v3605_v42, %v3602_v43  ;;  %v4400_v42 = vld [vmem:[%s5519_s4 + $0x40] sm:$0xff]   ;;  %v4401_v43 = vld [vmem:[%s5519_s4 + $0x90] sm:$0xff]  }
  0x85   :  { %v49_v46 = vpop.permute.xlu0 %48 }
  0x86   :  { %vm53_vm5 = vcmp.eq.s32.totalorder %v49_v46, %v43_v37  ;;  %3607 = vmatprep.mubr.msk.f32.mxu0 %vm98_vm3, %v77_v44  ;;  %vm52_vm6 = vcmp.eq.s32.totalorder %v49_v46, %v4691_v34  ;;  %v4395_v37 = vld [vmem:[%s5519_s4 + $0x58] sm:$0xff]   ;;  %v4402_v44 = vld [vmem:[%s5519_s4 + $0x48] sm:$0xff]   ;;  %v4404_v46 = vld [vmem:[%s5519_s4 + $0x60] sm:$0xff]  }
  0x87   :  { %v3604_v47 = vsel %vm53_vm5, 1.0, %v4570_v10  ;;  %3608 = vmatmul.mubr.msk.f32.vlgmr.msra.gmra.mrb[0].mxu0 %vm50_vm4, %v4571_v48 }
  0x88   :  { %v79_v49 = vadd.f32 %v3606_v45, %v3604_v47  ;;  %3952 = vmatpush3.bf16.msra.mxu0 %v4388_v60  ;;  %v4403_v45 = vld [vmem:[%s5519_s4 + $0x98] sm:$0xff]   ;;  %v4405_v47 = vld [vmem:[%s5519_s4 + $0xb0] sm:$0xff]  }
  0x89   :  { %3953 = vmatprep.subr.bf16.mxu0 %v4570_v10 }
  0x8a   :  { %3609 = vmatprep.mubr.msk.f32.mxu0 %vm98_vm3, %v79_v49  ;;  %v4407_v49 = vld [vmem:[%s5519_s4 + $0xb8] sm:$0xff]  }
  0x8b   :  { %3610 = vmatmul.mubr.msk.f32.gmra.mrb[2].mxu0 %vm52_vm6, %v4571_v48  ;;  %v4406_v48 = vld [vmem:[%s5519_s4 + $0x68] sm:$0xff]  }
  0x8c   :  { %3954 = vmatpush3.bf16.msra.mxu0 %v4390_v62  ;;  %3955 = vmatprep.mubr.msk.bf16.mxu0 %vm4572_vm8, %v4570_v10 }
  0x8d   :  { %3991 = vmatprep.subr.bf16.mxu0 %v4570_v10 }
 0x15a   :  { %v4707_v50 = vpop.f32.mrb[0].mxu0 }
 0x15b   :  { %v173_v51 = vpop.f32.mrb[1].mxu0  ;;  %v195_v52 = vsel %vm194_vm7, %v4707_v50, 0.0  ;;  %v204_v53 = vmul.f32 %v4707_v50, %v4707_v50 }
 0x15c   :  { %196 = vadd.xlane.f32.xlu1 %v195_v52  ;;  %v4408_v51 = vld [vmem:[%s5519_s4 + $0x80] sm:$0xff]   ;;  %v4409_v52 = vld [vmem:[%s5519_s4 + $0x88] sm:$0xff]  }
 0x15d   :  { %v206_v54 = vsel %vm194_vm7, %v204_v53, 0.0  ;;  %v4410_v53 = vld [vmem:[%s5519_s4 + $0xa0] sm:$0xff]  }
 0x15e   :  { %207 = vadd.xlane.f32.xlu0 %v206_v54  ;;  %v4714_v55 = vpop.f32.mrb[2].mxu0  ;;  %v4411_v54 = vld [vmem:[%s5519_s4 + $0xa8] sm:$0xff]  }
 0x15f   :  { %v178_v56 = vpop.f32.mrb[3].mxu0  ;;  %v198_v57 = vsel %vm194_vm7, %v4714_v55, 0.0  ;;  %v205_v58 = vmul.f32 %v4714_v55, %v4714_v55 }
 0x160   :  { %199 = vadd.xlane.f32.xlu1 %v198_v57 }
 0x161   :  { %v209_v59 = vsel %vm194_vm7, %v205_v58, 0.0 }
 0x164   :  { %210 = vadd.xlane.f32.xlu1 %v209_v59 }
 0x1e9   :  { %v197_v0 = vpop.xlane.xlu1 %196 }
 0x1ea   :  { %v202_v1 = vmul.f32 0.03125, %v197_v0 }
 0x1eb   :  { %v208_v2 = vpop.xlane.xlu0 %207 }
 0x1ec   :  { %v214_v3 = vmul.f32 %v202_v1, %v202_v1  ;;  %v212_v4 = vmul.f32 0.03125, %v208_v2  ;;  %v218_v18 = vsub.f32 %v4707_v50, %v202_v1 }
 0x1ed   :  { %v200_v5 = vpop.xlane.xlu1 %199 }
 0x1ee   :  { %v216_v6 = vsub.f32 %v212_v4, %v214_v3  ;;  %v203_v7 = vmul.f32 0.03125, %v200_v5 }
 0x1f0   :  { %v220_v8 = vadd.f32 1e-05, %v216_v6  ;;  %v215_v11 = vmul.f32 %v203_v7, %v203_v7  ;;  %v219_v22 = vsub.f32 %v4714_v55, %v203_v7 }
 0x1f1   :  { %v211_v9 = vpop.xlane.xlu1 %210 }
 0x1f2   :  { %4458 = vrsqrt.f32 %v220_v8  ;;  %v213_v12 = vmul.f32 0.03125, %v211_v9 }
 0x1f4   :  { %v217_v13 = vsub.f32 %v213_v12, %v215_v11 }
 0x1f6   :  { %v221_v14 = vadd.f32 1e-05, %v217_v13 }
 0x1f8   :  { %4460 = vrsqrt.f32 %v221_v14 }
 0x1fc   :  { %v4459_v16 = vpop.eup %4458 }
 0x1fd   :  { %v224_v21 = vmul.f32 %v4459_v16, %v218_v18 }
 0x1ff   :  { %v230_v25 = vmul.f32 %v229_v19, %v224_v21 }
 0x201   :  { %v236_v28 = vadd.f32 %v235_v24, %v230_v25 }
 0x202   :  { %v4461_v23 = vpop.eup %4460 }
 0x203   :  { %v225_v26 = vmul.f32 %v4461_v23, %v219_v22 }
 0x205   :  { %v231_v27 = vmul.f32 %v229_v19, %v225_v26 }
 0x207   :  { %v237_v29 = vadd.f32 %v235_v24, %v231_v27 }
 0x209   :  { %v4764_v32 = vpack.c.bf16 %v237_v29, %v236_v28 }
 0x20b   :  { %3956 = vmatmul.mubr.msk.bf16.vlgmr.msra.gmra.mrb[4].mxu0 %vm194_vm7, %v4764_v32  ;;  %3964 = vmatmul.mubr.msk.bf16.vlgmr.msra.gmra.mrb[0].mxu1 %vm194_vm7, %v4764_v32 }
 0x20c   :  { %3968 = vmatpush3.bf16.msra.mxu1 %v4392_v30  ;;  %3992 = vmatpush3.bf16.msra.mxu0 %v4393_v31 }
 0x20d   :  { %3969 = vmatprep.subr.bf16.mxu1 %v4570_v10  ;;  %3993 = vmatprep.subr.bf16.mxu0 %v4570_v10 }
 0x20e   :  { %3971 = vmatprep.mubr.msk.bf16.mxu1 %vm4572_vm8, %v4570_v10  ;;  %3995 = vmatprep.mubr.msk.bf16.mxu0 %vm4572_vm8, %v4570_v10 }
 0x210   :  { %3970 = vmatpush3.bf16.msra.mxu1 %v4394_v36  ;;  %3994 = vmatpush3.bf16.msra.mxu0 %v4395_v37 }
 0x211   :  { %3975 = vmatprep.subr.bf16.mxu1 %v4570_v10  ;;  %4007 = vmatprep.subr.bf16.mxu0 %v4570_v10 }
 0x213   :  { %3972 = vmatmul.mubr.msk.bf16.vlgmr.msra.gmra.mrb[4].mxu1 %vm194_vm7, %v4764_v32  ;;  %3996 = vmatmul.mubr.msk.bf16.vlgmr.msra.gmra.mrb[8].mxu0 %vm194_vm7, %v4764_v32 }
 0x214   :  { %3976 = vmatpush3.bf16.msra.mxu1 %v4396_v38  ;;  %4008 = vmatpush3.bf16.msra.mxu0 %v4397_v39 }
 0x215   :  { %3977 = vmatprep.subr.bf16.mxu1 %v4570_v10  ;;  %4009 = vmatprep.subr.bf16.mxu0 %v4570_v10 }
 0x216   :  { %3979 = vmatprep.mubr.msk.bf16.mxu1 %vm4572_vm8, %v4570_v10  ;;  %4011 = vmatprep.mubr.msk.bf16.mxu0 %vm4572_vm8, %v4570_v10 }
 0x218   :  { %3978 = vmatpush3.bf16.msra.mxu1 %v4398_v40  ;;  %4010 = vmatpush3.bf16.msra.mxu0 %v4399_v41 }
 0x219   :  { %3983 = vmatprep.subr.bf16.mxu1 %v4570_v10  ;;  %4023 = vmatprep.subr.bf16.mxu0 %v4570_v10 }
 0x21b   :  { %3980 = vmatmul.mubr.msk.bf16.vlgmr.msra.gmra.mrb[8].mxu1 %vm194_vm7, %v4764_v32  ;;  %4012 = vmatmul.mubr.msk.bf16.vlgmr.msra.gmra.mrb[12].mxu0 %vm194_vm7, %v4764_v32 }
 0x21c   :  { %3984 = vmatpush3.bf16.msra.mxu1 %v4400_v42  ;;  %4024 = vmatpush3.bf16.msra.mxu0 %v4401_v43 }
 0x21d   :  { %3985 = vmatprep.subr.bf16.mxu1 %v4570_v10  ;;  %4025 = vmatprep.subr.bf16.mxu0 %v4570_v10 }
 0x21e   :  { %3987 = vmatprep.mubr.msk.bf16.mxu1 %vm4572_vm8, %v4570_v10  ;;  %4027 = vmatprep.mubr.msk.bf16.mxu0 %vm4572_vm8, %v4570_v10 }
 0x220   :  { %3986 = vmatpush3.bf16.msra.mxu1 %v4402_v44  ;;  %4026 = vmatpush3.bf16.msra.mxu0 %v4403_v45 }
 0x221   :  { %3999 = vmatprep.subr.bf16.mxu1 %v4570_v10  ;;  %4039 = vmatprep.subr.bf16.mxu0 %v4570_v10 }
 0x223   :  { %3988 = vmatmul.mubr.msk.bf16.vlgmr.msra.gmra.mrb[12].mxu1 %vm194_vm7, %v4764_v32  ;;  %4028 = vmatmul.mubr.msk.bf16.vlgmr.msra.gmra.mrb[16].mxu0 %vm194_vm7, %v4764_v32 }
 0x224   :  { %4000 = vmatpush3.bf16.msra.mxu1 %v4404_v46  ;;  %4040 = vmatpush3.bf16.msra.mxu0 %v4405_v47 }
 0x225   :  { %4001 = vmatprep.subr.bf16.mxu1 %v4570_v10  ;;  %4041 = vmatprep.subr.bf16.mxu0 %v4570_v10 }
 0x226   :  { %4003 = vmatprep.mubr.msk.bf16.mxu1 %vm4572_vm8, %v4570_v10  ;;  %4043 = vmatprep.mubr.msk.bf16.mxu0 %vm4572_vm8, %v4570_v10 }
 0x228   :  { %4002 = vmatpush3.bf16.msra.mxu1 %v4406_v48  ;;  %4042 = vmatpush3.bf16.msra.mxu0 %v4407_v49 }
 0x229   :  { %4015 = vmatprep.subr.bf16.mxu1 %v4570_v10  ;;  %4053 = vmatprep.subr.bf16.mxu0 %v4570_v10 }
 0x22b   :  { %4004 = vmatmul.mubr.msk.bf16.vlgmr.msra.gmra.mrb[16].mxu1 %vm194_vm7, %v4764_v32  ;;  %4044 = vmatmul.mubr.msk.bf16.vlgmr.msra.gmra.mrb[20].mxu0 %vm194_vm7, %v4764_v32 }
 0x22c   :  { %4016 = vmatpush3.bf16.msra.mxu1 %v4408_v51  ;;  %4019 = vmatprep.mubr.msk.bf16.mxu1 %vm4572_vm8, %v4570_v10 }
 0x22d   :  { %4017 = vmatprep.subr.bf16.mxu1 %v4570_v10  ;;  %4055 = vmatprep.mubr.msk.bf16.mxu0 %vm4572_vm8, %v4570_v10 }
 0x230   :  { %4018 = vmatpush3.bf16.msra.mxu1 %v4409_v52 }
 0x231   :  { %4031 = vmatprep.subr.bf16.mxu1 %v4570_v10 }
 0x233   :  { %4020 = vmatmul.mubr.msk.bf16.vlgmr.msra.gmra.mrb[20].mxu1 %vm194_vm7, %v4764_v32 }
 0x234   :  { %4032 = vmatpush3.bf16.msra.mxu1 %v4410_v53  ;;  %4035 = vmatprep.mubr.msk.bf16.mxu1 %vm4572_vm8, %v4570_v10 }
 0x235   :  { %4033 = vmatprep.subr.bf16.mxu1 %v4570_v10 }
 0x238   :  { %4034 = vmatpush3.bf16.msra.mxu1 %v4411_v54 }
 0x239   :  { %4047 = vmatprep.subr.bf16.mxu1 %v4570_v10 }
 0x23b   :  { %4036 = vmatmul.mubr.msk.bf16.vlgmr.msra.gmra.mrb[24].mxu1 %vm194_vm7, %v4764_v32 }
 0x23c   :  { %4049 = vmatprep.mubr.msk.bf16.mxu1 %vm4572_vm8, %v4570_v10 }
 0x2de   :  { %v4888_v56 = vpop.f32.mrb[4].mxu0  ;;  %v389_v57 = vpop.f32.mrb[0].mxu1 }
 0x2df   :  { %v3957_v58 = vpop.f32.mrb[5].mxu0  ;;  %v3965_v59 = vpop.f32.mrb[1].mxu1 }
 0x2e0   :  { %v4890_v60 = vpop.f32.mrb[6].mxu0  ;;  %v392_v61 = vpop.f32.mrb[2].mxu1 }
 0x2e1   :  { %v926_v62 = vpack.c.bf16 %v4890_v60, %v4888_v56  ;;  %v927_v63 = vpack.c.bf16 %v392_v61, %v389_v57  ;;  %v3958_v0 = vpop.f32.mrb[7].mxu0  ;;  %v3966_v1 = vpop.f32.mrb[3].mxu1 }
 0x2e2   :  { %v183_v1 = vand.u32 4294967288, %v4689_v33 }
 0x2e6   :  { %v4894_v2 = vpop.f32.mrb[4].mxu1  ;;  %v601_v3 = vpop.f32.mrb[8].mxu0 }
 0x2e7   :  { %v3973_v4 = vpop.f32.mrb[5].mxu1  ;;  %v3997_v5 = vpop.f32.mrb[9].mxu0 }
 0x2e8   :  { %v4896_v6 = vpop.f32.mrb[6].mxu1  ;;  %v604_v7 = vpop.f32.mrb[10].mxu0  ;;  %v4573_v4 = vmov -1e+30  }
 0x2e9   :  { %v928_v8 = vpack.c.bf16 %v4896_v6, %v4894_v2  ;;  %v931_v9 = vpack.c.bf16 %v604_v7, %v601_v3  ;;  %v3974_v11 = vpop.f32.mrb[7].mxu1  ;;  %v3998_v12 = vpop.f32.mrb[11].mxu0  ;;  %v185_v2 = vand.u32 4294967288, %v4691_v34  ;;  %v184_v3 = vand.u32 4294967288, %v4694_v35 }
 0x2eb   :  { %v990_v13 = vsel %vm938_vm9, %v931_v9, 0  ;;  %vm186_vm10 = vcmp.eq.s32.totalorder %v183_v1, %v185_v2  ;;  %vm187_vm13 = vcmp.eq.s32.totalorder %v184_v3, %v185_v2 }
 0x2ec   :  { %4054 = vmatpush3.bf16.xpose.msra.mxu0 %v990_v13  ;;  %vm190_vm14 = vmand %vm186_vm10, %vm188_vm11 }
 0x2ed   :  { %4065 = vmatprep.subr.bf16.mxu0 %v4570_v10  ;;  %vm191_vm15 = vmand %vm187_vm13, %vm189_vm12  ;;  %v4941_v5 = vsel %vm190_vm14, 0.0, %v4573_v4 }
 0x2ee   :  { %v495_v14 = vpop.f32.mrb[8].mxu1  ;;  %v707_v16 = vpop.f32.mrb[12].mxu0  ;;  %v4943_v7 = vsel %vm191_vm15, 0.0, %v4573_v4 }
 0x2ef   :  { %v3981_v18 = vpop.f32.mrb[9].mxu1  ;;  %v4013_v19 = vpop.f32.mrb[13].mxu0 }
 0x2f0   :  { %v498_v21 = vpop.f32.mrb[10].mxu1  ;;  %v710_v22 = vpop.f32.mrb[14].mxu0 }
 0x2f1   :  { %v929_v23 = vpack.c.bf16 %v498_v21, %v495_v14  ;;  %v933_v24 = vpack.c.bf16 %v710_v22, %v707_v16  ;;  %v3982_v25 = vpop.f32.mrb[11].mxu1  ;;  %v4014_v26 = vpop.f32.mrb[15].mxu0 }
 0x2f3   :  { %v1084_v27 = vsel %vm938_vm9, %v933_v24, 0  ;;  %4056 = vmatmul.mubr.msk.bf16.vlgmr.msra.gmra.mrb[24].mxu0 %vm938_vm9, %v927_v63 }
 0x2f4   :  { %4066 = vmatpush3.bf16.xpose.msra.mxu0 %v1084_v27  ;;  %4067 = vmatprep.mubr.msk.bf16.mxu0 %vm4572_vm8, %v4570_v10 }
 0x2f5   :  { %4077 = vmatprep.subr.bf16.mxu0 %v4570_v10 }
 0x2f6   :  { %v548_v28 = vpop.f32.mrb[12].mxu1  ;;  %v813_v29 = vpop.f32.mrb[16].mxu0 }
 0x2f7   :  { %v3989_v30 = vpop.f32.mrb[13].mxu1  ;;  %v4029_v31 = vpop.f32.mrb[17].mxu0 }
 0x2f8   :  { %v551_v32 = vpop.f32.mrb[14].mxu1  ;;  %v816_v36 = vpop.f32.mrb[18].mxu0 }
 0x2f9   :  { %v930_v37 = vpack.c.bf16 %v551_v32, %v548_v28  ;;  %v935_v38 = vpack.c.bf16 %v816_v36, %v813_v29  ;;  %v3990_v39 = vpop.f32.mrb[15].mxu1  ;;  %v4030_v40 = vpop.f32.mrb[19].mxu0 }
 0x2fb   :  { %v943_v41 = vsel %vm938_vm9, %v930_v37, 0  ;;  %4068 = vmatmul.mubr.msk.bf16.vlgmr.msra.gmra.mrb[28].mxu0 %vm938_vm9, %v929_v23 }
 0x2fc   :  { %4048 = vmatpush3.bf16.xpose.msra.mxu1 %v943_v41  ;;  %4078 = vmatpush3.bf16.msra.mxu0 %v935_v38 }
 0x2fd   :  { %4059 = vmatprep.subr.bf16.mxu1 %v4570_v10  ;;  %4079 = vmatprep.mubr.msk.bf16.mxu0 %vm4572_vm8, %v4570_v10 }
 0x2fe   :  { %v654_v42 = vpop.f32.mrb[16].mxu1  ;;  %v4912_v43 = vpop.f32.mrb[20].mxu0  ;;  %4089 = vmatprep.subr.bf16.mxu0 %v4570_v10 }
 0x2ff   :  { %v4005_v44 = vpop.f32.mrb[17].mxu1  ;;  %v4045_v45 = vpop.f32.mrb[21].mxu0 }
 0x300   :  { %v657_v46 = vpop.f32.mrb[18].mxu1  ;;  %v4915_v47 = vpop.f32.mrb[22].mxu0 }
 0x301   :  { %v932_v48 = vpack.c.bf16 %v657_v46, %v654_v42  ;;  %v937_v49 = vpack.c.bf16 %v4915_v47, %v4912_v43  ;;  %v4006_v51 = vpop.f32.mrb[19].mxu1  ;;  %v4046_v52 = vpop.f32.mrb[23].mxu0  ;;  %v1395_v43 = vld [vmem:[%s5520_s5] sm:$0xf] }
 0x302   :  { %v1408_v47 = vsel %vm1406_vm0, %v1395_v43, 0 }
 0x303   :  { %v1037_v53 = vsel %vm938_vm9, %v932_v48, 0  ;;  %4050 = vmatmul.mubr.msk.bf16.vlgmr.msra.gmra.mrb[28].mxu1 %vm938_vm9, %v926_v62 }
 0x304   :  { %4060 = vmatpush3.bf16.xpose.msra.mxu1 %v1037_v53  ;;  %4061 = vmatprep.mubr.msk.bf16.mxu1 %vm4572_vm8, %v4570_v10 }
 0x305   :  { %4071 = vmatprep.subr.bf16.mxu1 %v4570_v10 }
 0x306   :  { %v760_v54 = vpop.f32.mrb[20].mxu1 }
 0x307   :  { %v4021_v56 = vpop.f32.mrb[21].mxu1 }
 0x308   :  { %v763_v57 = vpop.f32.mrb[22].mxu1 }
 0x309   :  { %v934_v58 = vpack.c.bf16 %v763_v57, %v760_v54  ;;  %v4022_v59 = vpop.f32.mrb[23].mxu1 }
 0x30b   :  { %4062 = vmatmul.mubr.msk.bf16.vlgmr.msra.gmra.mrb[32].mxu1 %vm938_vm9, %v928_v8 }
 0x30c   :  { %4072 = vmatpush3.bf16.msra.mxu1 %v934_v58  ;;  %4073 = vmatprep.mubr.msk.bf16.mxu1 %vm4572_vm8, %v4570_v10 }
 0x30d   :  { %4083 = vmatprep.subr.bf16.mxu1 %v4570_v10 }
 0x30e   :  { %v4928_v60 = vpop.f32.mrb[24].mxu1 }
 0x30f   :  { %v4037_v61 = vpop.f32.mrb[25].mxu1 }
 0x310   :  { %v4930_v62 = vpop.f32.mrb[26].mxu1 }
 0x311   :  { %v936_v63 = vpack.c.bf16 %v4930_v62, %v4928_v60  ;;  %v4038_v0 = vpop.f32.mrb[27].mxu1 }
 0x3c6   :  { %v1026_v6 = vpop.f32.mrb[24].mxu0 }
 0x3c7   :  { %v1027_v8 = vadd.f32 %v1026_v6, %v4941_v5  ;;  %v4057_v9 = vpop.f32.mrb[25].mxu0 }
 0x3c8   :  { %v1029_v11 = vpop.f32.mrb[26].mxu0 }
 0x3c9   :  { %v1030_v12 = vadd.f32 %v1029_v11, %v4943_v7  ;;  %v4058_v13 = vpop.f32.mrb[27].mxu0  ;;  %v1133_v14 = vsel %vm98_vm3, %v1027_v8, -inf }
 0x3ca   :  { %1134 = vmax.xlane.f32.xlu1 %v1133_v14 }
 0x3cb   :  { %v1136_v34 = vsel %vm98_vm3, %v1030_v12, -inf }
 0x3ce   :  { %1137 = vmax.xlane.f32.xlu1 %v1136_v34  ;;  %v1120_v35 = vpop.f32.mrb[28].mxu0 }
 0x3cf   :  { %v4069_v16 = vpop.f32.mrb[29].mxu0  ;;  %v1121_v41 = vadd.f32 %v1120_v35, %v4941_v5 }
 0x3d0   :  { %v1123_v18 = vpop.f32.mrb[30].mxu0 }
 0x3d1   :  { %v1124_v19 = vadd.f32 %v1123_v18, %v4943_v7  ;;  %v4070_v21 = vpop.f32.mrb[31].mxu0  ;;  %v1145_v44 = vsel %vm98_vm3, %v1121_v41, -inf }
 0x3d3   :  { %v1148_v22 = vsel %vm98_vm3, %v1124_v19, -inf }
 0x3d4   :  { %1149 = vmax.xlane.f32.xlu0 %v1148_v22 }
 0x3d6   :  { %v979_v23 = vpop.f32.mrb[28].mxu1 }
 0x3d7   :  { %v980_v24 = vadd.f32 %v979_v23, %v4941_v5  ;;  %v4051_v25 = vpop.f32.mrb[29].mxu1 }
 0x3d8   :  { %v982_v26 = vpop.f32.mrb[30].mxu1 }
 0x3d9   :  { %v983_v27 = vadd.f32 %v982_v26, %v4943_v7  ;;  %v4052_v28 = vpop.f32.mrb[31].mxu1  ;;  %v1127_v29 = vsel %vm98_vm3, %v980_v24, -inf }
 0x3da   :  { %1128 = vmax.xlane.f32.xlu1 %v1127_v29 }
 0x3db   :  { %v1130_v30 = vsel %vm98_vm3, %v983_v27, -inf }
 0x3de   :  { %v1073_v31 = vpop.f32.mrb[32].mxu1  ;;  %1131 = vmax.xlane.f32.xlu1 %v1130_v30 }
 0x3df   :  { %v1074_v32 = vadd.f32 %v1073_v31, %v4941_v5  ;;  %v4063_v36 = vpop.f32.mrb[33].mxu1 }
 0x3e0   :  { %v1076_v37 = vpop.f32.mrb[34].mxu1 }
 0x3e1   :  { %v1077_v38 = vadd.f32 %v1076_v37, %v4943_v7  ;;  %v4064_v39 = vpop.f32.mrb[35].mxu1  ;;  %v1139_v40 = vsel %vm98_vm3, %v1074_v32, -inf }
 0x3e2   :  { %1140 = vmax.xlane.f32.xlu1 %v1139_v40 }
 0x3e3   :  { %v1142_v42 = vsel %vm98_vm3, %v1077_v38, -inf }
 0x3e6   :  { %1143 = vmax.xlane.f32.xlu1 %v1142_v42 }
 0x3ea   :  { %1146 = vmax.xlane.f32.xlu1 %v1145_v44 }
 0x457   :  { %v1135_v45 = vpop.xlane.xlu1 %1134 }
 0x458   :  { %v1153_v48 = vsub.f32 %v1027_v8, %v1135_v45 }
 0x45a   :  { %v1163_v53 = vmul.f32 1.442695, %v1153_v48 }
 0x45b   :  { %v1138_v46 = vpop.xlane.xlu1 %1137 }
 0x45c   :  { %v1154_v54 = vsub.f32 %v1030_v12, %v1138_v46 }
 0x45e   :  { %v1165_v59 = vmul.f32 1.442695, %v1154_v54 }
 0x461   :  { %v1150_v0 = vpop.xlane.xlu0 %1149 }
 0x462   :  { %v1158_v3 = vsub.f32 %v1124_v19, %v1150_v0 }
 0x464   :  { %v1173_v11 = vmul.f32 1.442695, %v1158_v3 }
 0x467   :  { %v1129_v51 = vpop.xlane.xlu1 %1128 }
 0x468   :  { %v1151_v52 = vsub.f32 %v980_v24, %v1129_v51 }
 0x46a   :  { %v1159_v56 = vmul.f32 1.442695, %v1151_v52 }
 0x46b   :  { %v1132_v57 = vpop.xlane.xlu1 %1131 }
 0x46c   :  { %4462 = vpow2.f32 %v1159_v56  ;;  %v1152_v58 = vsub.f32 %v983_v27, %v1132_v57 }
 0x46d   :  { %4464 = vpow2.f32 %v1163_v53 }
 0x46e   :  { %v1161_v61 = vmul.f32 1.442695, %v1152_v58 }
 0x46f   :  { %v1141_v1 = vpop.xlane.xlu1 %1140 }
 0x470   :  { %4466 = vpow2.f32 %v1161_v61  ;;  %v1155_v2 = vsub.f32 %v1074_v32, %v1141_v1 }
 0x471   :  { %4468 = vpow2.f32 %v1165_v59 }
 0x472   :  { %v1167_v4 = vmul.f32 1.442695, %v1155_v2 }
 0x473   :  { %v1144_v6 = vpop.xlane.xlu1 %1143 }
 0x474   :  { %4470 = vpow2.f32 %v1167_v4  ;;  %v1156_v8 = vsub.f32 %v1077_v38, %v1144_v6 }
 0x476   :  { %v4463_v9 = vpop.eup %4462  ;;  %v1169_v12 = vmul.f32 1.442695, %v1156_v8  ;;  %v1397_v8 = vld [vmem:[%s5520_s5 + $0x8] sm:$0xf] }
 0x477   :  { %v1147_v13 = vpop.xlane.xlu1 %1146  ;;  %v1175_v14 = vsel %vm98_vm3, %v4463_v9, 0.0  ;;  %v4465_v34 = vpop.eup %4464 }
 0x478   :  { %4472 = vpow2.f32 %v1169_v12  ;;  %v1157_v35 = vsub.f32 %v1121_v41, %v1147_v13  ;;  %1176 = vadd.xlane.f32.xlu1 %v1175_v14  ;;  %v1181_v21 = vsel %vm98_vm3, %v4465_v34, 0.0  ;;  %v1502_v14 = vsel %vm1406_vm0, %v1397_v8, 0 }
 0x479   :  { %4474 = vpow2.f32 %v1173_v11 }
 0x47a   :  { %v4467_v16 = vpop.eup %4466  ;;  %v1171_v18 = vmul.f32 1.442695, %v1157_v35  ;;  %v1398_v35 = vld [vmem:[%s5520_s5 + $0xc] sm:$0xf] }
 0x47b   :  { %v1178_v19 = vsel %vm98_vm3, %v4467_v16, 0.0  ;;  %v4469_v22 = vpop.eup %4468 }
 0x47c   :  { %4476 = vpow2.f32 %v1171_v18  ;;  %1182 = vadd.xlane.f32.xlu1 %v1181_v21  ;;  %1179 = vadd.xlane.f32.xlu0 %v1178_v19  ;;  %v1184_v25 = vsel %vm98_vm3, %v4469_v22, 0.0 }
 0x47e   :  { %v4471_v23 = vpop.eup %4470 }
 0x47f   :  { %v1187_v24 = vsel %vm98_vm3, %v4471_v23, 0.0 }
 0x480   :  { %1188 = vadd.xlane.f32.xlu1 %v1187_v24  ;;  %1185 = vadd.xlane.f32.xlu0 %v1184_v25 }
 0x482   :  { %v4473_v26 = vpop.eup %4472 }
 0x483   :  { %v1190_v27 = vsel %vm98_vm3, %v4473_v26, 0.0  ;;  %v4475_v28 = vpop.eup %4474 }
 0x484   :  { %1191 = vadd.xlane.f32.xlu0 %v1190_v27  ;;  %v1196_v31 = vsel %vm98_vm3, %v4475_v28, 0.0 }
 0x486   :  { %v4477_v29 = vpop.eup %4476 }
 0x487   :  { %v1193_v30 = vsel %vm98_vm3, %v4477_v29, 0.0 }
 0x488   :  { %1194 = vadd.xlane.f32.xlu1 %v1193_v30  ;;  %1197 = vadd.xlane.f32.xlu0 %v1196_v31 }
 0x505   :  { %v1177_v32 = vpop.xlane.xlu1 %1176 }
 0x506   :  { %4478 = vrcp.f32 %v1177_v32 }
 0x509   :  { %v1183_v36 = vpop.xlane.xlu1 %1182  ;;  %v1180_v37 = vpop.xlane.xlu0 %1179 }
 0x50a   :  { %4480 = vrcp.f32 %v1180_v37 }
 0x50b   :  { %4482 = vrcp.f32 %v1183_v36 }
 0x50d   :  { %v1189_v38 = vpop.xlane.xlu1 %1188  ;;  %v1186_v39 = vpop.xlane.xlu0 %1185 }
 0x50e   :  { %4484 = vrcp.f32 %v1186_v39 }
 0x50f   :  { %4486 = vrcp.f32 %v1189_v38 }
 0x510   :  { %v4479_v41 = vpop.eup %4478 }
 0x511   :  { %v1192_v40 = vpop.xlane.xlu0 %1191  ;;  %v1207_v46 = vmul.f32 %v4479_v41, %v4463_v9 }
 0x512   :  { %4488 = vrcp.f32 %v1192_v40 }
 0x514   :  { %v4481_v42 = vpop.eup %4480 }
 0x515   :  { %v1195_v44 = vpop.xlane.xlu1 %1194  ;;  %v1198_v45 = vpop.xlane.xlu0 %1197  ;;  %v1208_v48 = vmul.f32 %v4481_v42, %v4467_v16 }
 0x516   :  { %4490 = vrcp.f32 %v1195_v44  ;;  %v4483_v51 = vpop.eup %4482 }
 0x517   :  { %4492 = vrcp.f32 %v1198_v45  ;;  %v1215_v52 = vpack.c.bf16 %v1208_v48, %v1207_v46  ;;  %v1209_v56 = vmul.f32 %v4483_v51, %v4465_v34 }
 0x518   :  { %v4485_v53 = vpop.eup %4484 }
 0x519   :  { %v4487_v54 = vpop.eup %4486  ;;  %v1210_v57 = vmul.f32 %v4485_v53, %v4469_v22  ;;  %4074 = vmatmul.mubr.msk.bf16.vlgmr.msra.gmra.mrb[36].mxu1 %vm98_vm3, %v1215_v52  ;;  %v1549_v22 = vsel %vm1406_vm0, %v1398_v35, 0 }
 0x51a   :  { %4084 = vmatpush3.bf16.msra.mxu1 %v936_v63  ;;  %4085 = vmatprep.mubr.msk.bf16.mxu1 %vm4572_vm8, %v4570_v10  ;;  %v1211_v61 = vmul.f32 %v4487_v54, %v4471_v23 }
 0x51b   :  { %v1216_v59 = vpack.c.bf16 %v1210_v57, %v1209_v56  ;;  %4095 = vmatprep.subr.bf16.mxu1 %v4570_v10 }
 0x51c   :  { %v4489_v58 = vpop.eup %4488 }
 0x51d   :  { %v1212_v0 = vmul.f32 %v4489_v58, %v4473_v26  ;;  %4080 = vmatmul.mubr.msk.bf16.vlgmr.msra.gmra.mrb[32].mxu0 %vm98_vm3, %v1216_v59 }
 0x51e   :  { %4090 = vmatpush3.bf16.msra.mxu0 %v937_v49  ;;  %4091 = vmatprep.mubr.msk.bf16.mxu0 %vm4572_vm8, %v4570_v10  ;;  %v1396_v49 = vld [vmem:[%s5520_s5 + $0x4] sm:$0xf] }
 0x51f   :  { %v1217_v1 = vpack.c.bf16 %v1212_v0, %v1211_v61  ;;  %4101 = vmatprep.subr.bf16.mxu0 %v4570_v10  ;;  %v1455_v4 = vsel %vm1406_vm0, %v1396_v49, 0  ;;  %v5027_v61 = vsub.s32 2, %v4689_v33 }
 0x520   :  { %v4491_v60 = vpop.eup %4490 }
 0x521   :  { %v4493_v62 = vpop.eup %4492  ;;  %v1213_v63 = vmul.f32 %v4491_v60, %v4477_v29  ;;  %4086 = vmatmul.mubr.msk.bf16.vlgmr.msra.gmra.mrb[40].mxu1 %vm98_vm3, %v1217_v1  ;;  %v1611_v43 = vrot.slane %v4747_v17, %v5027_v61 }
 0x522   :  { %v1214_v2 = vmul.f32 %v4493_v62, %v4475_v28  ;;  %4097 = vmatprep.mubr.msk.bf16.mxu1 %vm4572_vm8, %v4570_v10  ;;  %4096 = vmatpush3.bf16.msra.mxu1 %v1408_v47 }
 0x523   :  { %4107 = vmatprep.subr.bf16.mxu1 %v4570_v10 }
 0x524   :  { %v1218_v3 = vpack.c.bf16 %v1214_v2, %v1213_v63 }
 0x526   :  { %4092 = vmatmul.mubr.msk.bf16.vlgmr.msra.gmra.mrb[36].mxu0 %vm98_vm3, %v1218_v3 }
 0x527   :  { %4103 = vmatprep.mubr.msk.bf16.mxu0 %vm4572_vm8, %v4570_v10  ;;  %4102 = vmatpush3.bf16.msra.mxu0 %v1455_v4 }
 0x528   :  { %4113 = vmatprep.subr.bf16.mxu0 %v4570_v10 }
 0x5ec   :  { %v1256_v6 = vpop.f32.mrb[36].mxu1 }
 0x5ed   :  { %v4075_v9 = vpop.f32.mrb[37].mxu1 }
 0x5ee   :  { %v1259_v11 = vpop.f32.mrb[38].mxu1 }
 0x5ef   :  { %v1399_v12 = vpack.c.bf16 %v1259_v11, %v1256_v6  ;;  %v4076_v13 = vpop.f32.mrb[39].mxu1 }
 0x5f0   :  { %v1300_v34 = vpop.f32.mrb[32].mxu0 }
 0x5f1   :  { %v4081_v16 = vpop.f32.mrb[33].mxu0  ;;  %4098 = vmatmul.mubr.msk.bf16.vlgmr.msra.gmra.mrb[44].mxu1 %vm938_vm9, %v1399_v12 }
 0x5f2   :  { %v1303_v18 = vpop.f32.mrb[34].mxu0  ;;  %4108 = vmatpush3.bf16.msra.mxu1 %v1502_v14  ;;  %4109 = vmatprep.mubr.msk.bf16.mxu1 %vm4572_vm8, %v4570_v10  ;;  %v4412_v16 = vld [vmem:[%s5521_s6] sm:$0xff]  }
 0x5f3   :  { %v1400_v21 = vpack.c.bf16 %v1303_v18, %v1300_v34  ;;  %v4082_v19 = vpop.f32.mrb[35].mxu0  ;;  %4119 = vmatprep.subr.bf16.mxu1 %v4570_v10  ;;  %v4413_v18 = vld [vmem:[%s5521_s6 + $0x8] sm:$0xff]  }
 0x5f4   :  { %v1344_v23 = vpop.f32.mrb[40].mxu1  ;;  %v4415_v19 = vld [vmem:[%s5522_s7 + $0x8] sm:$0xff]  }
 0x5f5   :  { %v4087_v24 = vpop.f32.mrb[41].mxu1  ;;  %4104 = vmatmul.mubr.msk.bf16.vlgmr.msra.gmra.mrb[40].mxu0 %vm938_vm9, %v1400_v21  ;;  %v4414_v21 = vld [vmem:[%s5522_s7] sm:$0xff]  }
 0x5f6   :  { %v1347_v25 = vpop.f32.mrb[42].mxu1  ;;  %4114 = vmatpush3.bf16.msra.mxu0 %v1549_v22  ;;  %4115 = vmatprep.mubr.msk.bf16.mxu0 %vm4572_vm8, %v4570_v10  ;;  %v4416_v22 = vld [vmem:[%s5522_s7 + $0x10] sm:$0xff]   ;;  %v4418_v24 = vld [vmem:[%s5522_s7 + $0x20] sm:$0xff]  }
 0x5f7   :  { %v1401_v26 = vpack.c.bf16 %v1347_v25, %v1344_v23  ;;  %v4088_v27 = vpop.f32.mrb[43].mxu1  ;;  %4127 = vmatprep.subr.bf16.mxu0 %v4570_v10  ;;  %v4417_v23 = vld [vmem:[%s5522_s7 + $0x18] sm:$0xff]   ;;  %v4419_v25 = vld [vmem:[%s5522_s7 + $0x28] sm:$0xff]  }
 0x5f9   :  { %v1388_v28 = vpop.f32.mrb[36].mxu0  ;;  %4110 = vmatmul.mubr.msk.bf16.vlgmr.msra.gmra.mrb[48].mxu1 %vm938_vm9, %v1401_v26 }
 0x5fa   :  { %v4093_v29 = vpop.f32.mrb[37].mxu0  ;;  %4123 = vmatprep.mubr.msk.bf16.mxu1 %vm4572_vm8, %v4570_v10  ;;  %4120 = vmatpush3.bf16.msra.mxu1 %v4412_v16 }
 0x5fb   :  { %v1391_v30 = vpop.f32.mrb[38].mxu0  ;;  %4121 = vmatprep.subr.bf16.mxu1 %v4570_v10 }
 0x5fc   :  { %v1402_v31 = vpack.c.bf16 %v1391_v30, %v1388_v28  ;;  %v4094_v32 = vpop.f32.mrb[39].mxu0 }
 0x5fe   :  { %4116 = vmatmul.mubr.msk.bf16.vlgmr.msra.gmra.mrb[44].mxu0 %vm938_vm9, %v1402_v31  ;;  %4122 = vmatpush3.bf16.msra.mxu1 %v4413_v18 }
 0x5ff   :  { %4143 = vmatprep.mubr.msk.bf16.mxu0 %vm4572_vm8, %v4570_v10  ;;  %4147 = vmatprep.subr.bf16.mxu1 %v4570_v10 }
 0x600   :  { %4128 = vmatpush3.bf16.msra.mxu0 %v4414_v21 }
 0x601   :  { %4129 = vmatprep.subr.bf16.mxu0 %v4570_v10 }
 0x604   :  { %4130 = vmatpush3.bf16.msra.mxu0 %v4415_v19 }
 0x605   :  { %4131 = vmatprep.subr.bf16.mxu0 %v4570_v10 }
 0x608   :  { %4132 = vmatpush3.bf16.msra.mxu0 %v4416_v22 }
 0x609   :  { %4133 = vmatprep.subr.bf16.mxu0 %v4570_v10 }
 0x60c   :  { %4134 = vmatpush3.bf16.msra.mxu0 %v4417_v23 }
 0x60d   :  { %4135 = vmatprep.subr.bf16.mxu0 %v4570_v10 }
 0x610   :  { %4136 = vmatpush3.bf16.msra.mxu0 %v4418_v24 }
 0x611   :  { %4137 = vmatprep.subr.bf16.mxu0 %v4570_v10 }
 0x614   :  { %4138 = vmatpush3.bf16.msra.mxu0 %v4419_v25 }
 0x615   :  { %4139 = vmatprep.subr.bf16.mxu0 %v4570_v10 }
 0x6c4   :  { %v1444_v36 = vpop.f32.mrb[44].mxu1 }
 0x6c5   :  { %v4099_v37 = vpop.f32.mrb[45].mxu1  ;;  %v1592_v41 = vsel %vm194_vm7, %v1444_v36, 0.0 }
 0x6c6   :  { %v1447_v38 = vpop.f32.mrb[46].mxu1 }
 0x6c7   :  { %v4100_v39 = vpop.f32.mrb[47].mxu1  ;;  %v1599_v48 = vsel %vm194_vm7, %v1447_v38, 0.0 }
 0x6c8   :  { %v1491_v40 = vpop.f32.mrb[40].mxu0 }
 0x6c9   :  { %v1593_v42 = vsel %vm194_vm7, %v1491_v40, 0.0  ;;  %v4105_v44 = vpop.f32.mrb[41].mxu0 }
 0x6ca   :  { %v1594_v45 = vadd.f32 %v1593_v42, %v1592_v41  ;;  %v1494_v46 = vpop.f32.mrb[42].mxu0  ;;  %v1646_v44 = vsub.s32 3, %v4689_v33 }
 0x6cb   :  { %v1600_v51 = vsel %vm194_vm7, %v1494_v46, 0.0  ;;  %v4106_v52 = vpop.f32.mrb[43].mxu0 }
 0x6cc   :  { %v1601_v53 = vadd.f32 %v1600_v51, %v1599_v48  ;;  %v1538_v54 = vpop.f32.mrb[48].mxu1  ;;  %v1647_v46 = vrot.slane %v4747_v17, %v1646_v44  ;;  %v1652_v48 = vsub.s32 4, %v4689_v33 }
 0x6cd   :  { %v1595_v56 = vsel %vm194_vm7, %v1538_v54, 0.0  ;;  %v4111_v57 = vpop.f32.mrb[49].mxu1 }
 0x6ce   :  { %v1596_v58 = vadd.f32 %v1595_v56, %v1594_v45  ;;  %v1541_v59 = vpop.f32.mrb[50].mxu1 }
 0x6cf   :  { %v1602_v0 = vsel %vm194_vm7, %v1541_v59, 0.0  ;;  %v4112_v1 = vpop.f32.mrb[51].mxu1 }
 0x6d0   :  { %v1603_v60 = vadd.f32 %v1602_v0, %v1601_v53 }
 0x6d1   :  { %v1585_v62 = vpop.f32.mrb[44].mxu0 }
 0x6d2   :  { %v1597_v63 = vsel %vm194_vm7, %v1585_v62, 0.0  ;;  %v4117_v2 = vpop.f32.mrb[45].mxu0  ;;  %v4420_v62 = vld [vmem:[%s5522_s7 + $0x30] sm:$0xff]  }
 0x6d3   :  { %v1598_v3 = vadd.f32 %v1597_v63, %v1596_v58  ;;  %v1588_v47 = vpop.f32.mrb[46].mxu0  ;;  %v1653_v58 = vrot.slane %v4747_v17, %v1652_v48  ;;  %4140 = vmatpush3.bf16.msra.mxu0 %v4420_v62  ;;  %v4421_v63 = vld [vmem:[%s5522_s7 + $0x38] sm:$0xff]   ;;  %v182_v2 = vld [vmem:[%s5518_s3] sm:$0x7] }
 0x6d4   :  { %v1604_v49 = vsel %vm194_vm7, %v1588_v47, 0.0  ;;  %v4118_v4 = vpop.f32.mrb[47].mxu0  ;;  %4141 = vmatprep.subr.bf16.mxu0 %v4570_v10 }
 0x6d5   :  { %v1606_v6 = vadd.f32 %v1598_v3, %v4707_v50  ;;  %v1605_v8 = vadd.f32 %v1604_v49, %v1603_v60  ;;  %v1664_v3 = vrot.slane %v182_v2, %v4742_v15 }
 0x6d7   :  { %v5035_v9 = vadd.f32 %v1611_v43, %v1606_v6  ;;  %v1607_v11 = vadd.f32 %v1605_v8, %v4714_v55  ;;  %4142 = vmatpush3.bf16.msra.mxu0 %v4421_v63 }
 0x6d8   :  { %4179 = vmatprep.subr.bf16.mxu0 %v4570_v10 }
 0x6d9   :  { %v5038_v12 = vadd.f32 %v1611_v43, %v1607_v11  ;;  %v1614_v13 = vsel %vm194_vm7, %v5035_v9, 0.0  ;;  %v1622_v14 = vmul.f32 %v5035_v9, %v5035_v9 }
 0x6da   :  { %1615 = vadd.xlane.f32.xlu1 %v1614_v13 }
 0x6db   :  { %v1617_v34 = vsel %vm194_vm7, %v5038_v12, 0.0  ;;  %v1623_v50 = vmul.f32 %v5038_v12, %v5038_v12  ;;  %v1624_v35 = vsel %vm194_vm7, %v1622_v14, 0.0 }
 0x6dc   :  { %1618 = vadd.xlane.f32.xlu0 %v1617_v34  ;;  %v1742_v34 = vsub.s32 5, %v4689_v33 }
 0x6dd   :  { %v1627_v55 = vsel %vm194_vm7, %v1623_v50, 0.0 }
 0x6de   :  { %1625 = vadd.xlane.f32.xlu1 %v1624_v35  ;;  %v1743_v50 = vrot.slane %v4747_v17, %v1742_v34 }
 0x6e0   :  { %1628 = vadd.xlane.f32.xlu0 %v1627_v55 }
 0x767   :  { %v1616_v26 = vpop.xlane.xlu1 %1615 }
 0x768   :  { %v1620_v27 = vmul.f32 0.03125, %v1616_v26 }
 0x769   :  { %v1619_v28 = vpop.xlane.xlu0 %1618 }
 0x76a   :  { %v1621_v29 = vmul.f32 0.03125, %v1619_v28  ;;  %v1632_v31 = vmul.f32 %v1620_v27, %v1620_v27  ;;  %v1636_v45 = vsub.f32 %v5035_v9, %v1620_v27  ;;  %v4422_v27 = vld [vmem:[%s5519_s4 + $0xc0] sm:$0xff]  }
 0x76b   :  { %v1626_v30 = vpop.xlane.xlu1 %1625  ;;  %v4423_v28 = vld [vmem:[%s5519_s4 + $0x100] sm:$0xff]  }
 0x76c   :  { %v1630_v32 = vmul.f32 0.03125, %v1626_v30  ;;  %v1633_v37 = vmul.f32 %v1621_v29, %v1621_v29  ;;  %v1637_v52 = vsub.f32 %v5038_v12, %v1621_v29  ;;  %v4424_v29 = vld [vmem:[%s5519_s4 + $0xc8] sm:$0xff]  }
 0x76d   :  { %v1629_v36 = vpop.xlane.xlu0 %1628  ;;  %v4425_v30 = vld [vmem:[%s5519_s4 + $0x108] sm:$0xff]  }
 0x76e   :  { %v1634_v38 = vsub.f32 %v1630_v32, %v1632_v31  ;;  %v1631_v39 = vmul.f32 0.03125, %v1629_v36 }
 0x770   :  { %v1638_v40 = vadd.f32 1e-05, %v1634_v38  ;;  %v1635_v41 = vsub.f32 %v1631_v39, %v1633_v37 }
 0x772   :  { %4494 = vrsqrt.f32 %v1638_v40  ;;  %v1639_v42 = vadd.f32 1e-05, %v1635_v41 }
 0x774   :  { %4496 = vrsqrt.f32 %v1639_v42 }
 0x77c   :  { %v4495_v51 = vpop.eup %4494 }
 0x77d   :  { %v1642_v53 = vmul.f32 %v4495_v51, %v1636_v45 }
 0x77e   :  { %v4497_v54 = vpop.eup %4496 }
 0x77f   :  { %v1643_v56 = vmul.f32 %v4497_v54, %v1637_v52  ;;  %v1648_v57 = vmul.f32 %v1647_v46, %v1642_v53  ;;  %v1867_v54 = vsub.s32 6, %v4689_v33 }
 0x781   :  { %v1649_v59 = vmul.f32 %v1647_v46, %v1643_v56  ;;  %v1654_v0 = vadd.f32 %v1653_v58, %v1648_v57  ;;  %v4542_v57 = vld [vmem:[%s5517_s2] sm:$0xff] }
 0x783   :  { %v1655_v1 = vadd.f32 %v1653_v58, %v1649_v59  ;;  %v1868_v58 = vrot.slane %v4542_v57, %v1867_v54  ;;  %v1873_v59 = vsub.s32 7, %v4689_v33 }
 0x785   :  { %v1656_v60 = vpack.c.bf16 %v1655_v1, %v1654_v0  ;;  %v1874_v63 = vrot.slane %v4542_v57, %v1873_v59 }
 0x787   :  { %4124 = vmatmul.mubr.msk.bf16.vlgmr.msra.gmra.mrb[52].mxu1 %vm194_vm7, %v1656_v60 }
 0x788   :  { %4151 = vmatprep.mubr.msk.bf16.mxu1 %vm4572_vm8, %v4570_v10  ;;  %4148 = vmatpush3.bf16.msra.mxu1 %v4422_v27  ;;  %v4444_v27 = vld [vmem:[%s5519_s4 + $0x170] sm:$0xff]  }
 0x789   :  { %4149 = vmatprep.subr.bf16.mxu1 %v4570_v10 }
 0x78c   :  { %4150 = vmatpush3.bf16.msra.mxu1 %v4424_v29 }
 0x78d   :  { %4155 = vmatprep.subr.bf16.mxu1 %v4570_v10 }
 0x85a   :  { %v1714_v43 = vpop.f32.mrb[52].mxu1 }
 0x85b   :  { %v1715_v47 = vadd.f32 %v1714_v43, %v1664_v3  ;;  %v4125_v49 = vpop.f32.mrb[53].mxu1 }
 0x85c   :  { %v1717_v4 = vpop.f32.mrb[54].mxu1 }
 0x85d   :  { %v1718_v6 = vadd.f32 %v1717_v4, %v1664_v3  ;;  %v4126_v8 = vpop.f32.mrb[55].mxu1  ;;  %v1721_v11 = vmax.f32 %v1715_v47, 0.0  ;;  %v4426_v4 = vld [vmem:[%s5519_s4 + $0xd0] sm:$0xff]  }
 0x85f   :  { %v1722_v13 = vmax.f32 %v1718_v6, 0.0  ;;  %v4427_v6 = vld [vmem:[%s5519_s4 + $0x120] sm:$0xff]  }
 0x861   :  { %v1723_v14 = vpack.c.bf16 %v1722_v13, %v1721_v11  ;;  %v4428_v11 = vld [vmem:[%s5519_s4 + $0xd8] sm:$0xff]   ;;  %v4429_v13 = vld [vmem:[%s5519_s4 + $0x128] sm:$0xff]  }
 0x863   :  { %4144 = vmatmul.mubr.bf16.vlgmr.msra.gmra.mrb[48].mxu0 %v1723_v14  ;;  %v4430_v14 = vld [vmem:[%s5519_s4 + $0xe0] sm:$0xff]  }
 0x864   :  { %4183 = vmatprep.mubr.msk.bf16.mxu0 %vm4572_vm8, %v4570_v10  ;;  %4180 = vmatpush3.bf16.msra.mxu0 %v4423_v28  ;;  %v4445_v28 = vld [vmem:[%s5519_s4 + $0x178] sm:$0xff]  }
 0x865   :  { %4181 = vmatprep.subr.bf16.mxu0 %v4570_v10 }
 0x868   :  { %4182 = vmatpush3.bf16.msra.mxu0 %v4425_v30 }
 0x869   :  { %4195 = vmatprep.subr.bf16.mxu0 %v4570_v10 }
 0x936   :  { %v1826_v35 = vpop.f32.mrb[48].mxu0 }
 0x937   :  { %v1827_v55 = vadd.f32 %v1826_v35, %v1743_v50  ;;  %v4145_v16 = vpop.f32.mrb[49].mxu0  ;;  %v4432_v35 = vld [vmem:[%s5519_s4 + $0xe8] sm:$0xff]  }
 0x938   :  { %v1829_v18 = vpop.f32.mrb[50].mxu0  ;;  %v4434_v16 = vld [vmem:[%s5519_s4 + $0xf0] sm:$0xff]  }
 0x939   :  { %v5114_v21 = vadd.f32 %v1827_v55, %v5035_v9  ;;  %v1830_v19 = vadd.f32 %v1829_v18, %v1743_v50  ;;  %v4146_v22 = vpop.f32.mrb[51].mxu0  ;;  %v4431_v50 = vld [vmem:[%s5519_s4 + $0x140] sm:$0xff]   ;;  %v4433_v55 = vld [vmem:[%s5519_s4 + $0x148] sm:$0xff]  }
 0x93a   :  { %v4435_v18 = vld [vmem:[%s5519_s4 + $0x160] sm:$0xff]   ;;  %v4437_v22 = vld [vmem:[%s5519_s4 + $0x168] sm:$0xff]  }
 0x93b   :  { %v5117_v23 = vadd.f32 %v1830_v19, %v5038_v12  ;;  %v1835_v24 = vsel %vm194_vm7, %v5114_v21, 0.0  ;;  %v1843_v25 = vmul.f32 %v5114_v21, %v5114_v21  ;;  %v4436_v19 = vld [vmem:[%s5519_s4 + $0xf8] sm:$0xff]  }
 0x93c   :  { %1836 = vadd.xlane.f32.xlu1 %v1835_v24  ;;  %v4438_v24 = vld [vmem:[%s5519_s4 + $0x110] sm:$0xff]  }
 0x93d   :  { %v1838_v17 = vsel %vm194_vm7, %v5117_v23, 0.0  ;;  %v1844_v26 = vmul.f32 %v5117_v23, %v5117_v23  ;;  %v1845_v9 = vsel %vm194_vm7, %v1843_v25, 0.0  ;;  %v4439_v25 = vld [vmem:[%s5519_s4 + $0x118] sm:$0xff]  }
 0x93e   :  { %1839 = vadd.xlane.f32.xlu0 %v1838_v17  ;;  %v4440_v17 = vld [vmem:[%s5519_s4 + $0x130] sm:$0xff]  }
 0x93f   :  { %v1848_v12 = vsel %vm194_vm7, %v1844_v26, 0.0  ;;  %v4441_v26 = vld [vmem:[%s5519_s4 + $0x138] sm:$0xff]  }
 0x940   :  { %1846 = vadd.xlane.f32.xlu1 %v1845_v9  ;;  %v4442_v9 = vld [vmem:[%s5519_s4 + $0x150] sm:$0xff]  }
 0x942   :  { %1849 = vadd.xlane.f32.xlu0 %v1848_v12  ;;  %v4443_v12 = vld [vmem:[%s5519_s4 + $0x158] sm:$0xff]  }
 0x9c9   :  { %v1837_v31 = vpop.xlane.xlu1 %1836 }
 0x9ca   :  { %v1841_v32 = vmul.f32 0.03125, %v1837_v31 }
 0x9cb   :  { %v1840_v36 = vpop.xlane.xlu0 %1839 }
 0x9cc   :  { %v1842_v37 = vmul.f32 0.03125, %v1840_v36  ;;  %v1853_v39 = vmul.f32 %v1841_v32, %v1841_v32  ;;  %v1857_v56 = vsub.f32 %v5114_v21, %v1841_v32 }
 0x9cd   :  { %v1847_v38 = vpop.xlane.xlu1 %1846 }
 0x9ce   :  { %v1851_v40 = vmul.f32 0.03125, %v1847_v38  ;;  %v1854_v42 = vmul.f32 %v1842_v37, %v1842_v37  ;;  %v1858_v1 = vsub.f32 %v5117_v23, %v1842_v37 }
 0x9cf   :  { %v1850_v41 = vpop.xlane.xlu0 %1849 }
 0x9d0   :  { %v1855_v45 = vsub.f32 %v1851_v40, %v1853_v39  ;;  %v1852_v46 = vmul.f32 0.03125, %v1850_v41 }
 0x9d2   :  { %v1859_v51 = vadd.f32 1e-05, %v1855_v45  ;;  %v1856_v52 = vsub.f32 %v1852_v46, %v1854_v42 }
 0x9d4   :  { %4498 = vrsqrt.f32 %v1859_v51  ;;  %v1860_v53 = vadd.f32 1e-05, %v1856_v52 }
 0x9d6   :  { %4500 = vrsqrt.f32 %v1860_v53 }
 0x9de   :  { %v4499_v0 = vpop.eup %4498 }
 0x9df   :  { %v1863_v60 = vmul.f32 %v4499_v0, %v1857_v56 }
 0x9e0   :  { %v4501_v62 = vpop.eup %4500 }
 0x9e1   :  { %v1869_v2 = vmul.f32 %v1868_v58, %v1863_v60  ;;  %v1864_v3 = vmul.f32 %v4501_v62, %v1858_v1 }
 0x9e3   :  { %v1870_v43 = vmul.f32 %v1868_v58, %v1864_v3  ;;  %v1875_v47 = vadd.f32 %v1874_v63, %v1869_v2 }
 0x9e5   :  { %v1876_v49 = vadd.f32 %v1874_v63, %v1870_v43 }
 0x9e7   :  { %v5158_v8 = vpack.c.bf16 %v1876_v49, %v1875_v47 }
 0x9e9   :  { %4152 = vmatmul.mubr.msk.bf16.vlgmr.msra.gmra.mrb[56].mxu1 %vm194_vm7, %v5158_v8  ;;  %4184 = vmatmul.mubr.msk.bf16.vlgmr.msra.gmra.mrb[52].mxu0 %vm194_vm7, %v5158_v8 }
 0x9ea   :  { %4156 = vmatpush3.bf16.msra.mxu1 %v4426_v4  ;;  %4196 = vmatpush3.bf16.msra.mxu0 %v4427_v6 }
 0x9eb   :  { %4157 = vmatprep.subr.bf16.mxu1 %v4570_v10  ;;  %4197 = vmatprep.subr.bf16.mxu0 %v4570_v10 }
 0x9ec   :  { %4159 = vmatprep.mubr.msk.bf16.mxu1 %vm4572_vm8, %v4570_v10  ;;  %4199 = vmatprep.mubr.msk.bf16.mxu0 %vm4572_vm8, %v4570_v10 }
 0x9ee   :  { %4158 = vmatpush3.bf16.msra.mxu1 %v4428_v11  ;;  %4198 = vmatpush3.bf16.msra.mxu0 %v4429_v13 }
 0x9ef   :  { %4163 = vmatprep.subr.bf16.mxu1 %v4570_v10  ;;  %4211 = vmatprep.subr.bf16.mxu0 %v4570_v10 }
 0x9f1   :  { %4160 = vmatmul.mubr.msk.bf16.vlgmr.msra.gmra.mrb[60].mxu1 %vm194_vm7, %v5158_v8  ;;  %4200 = vmatmul.mubr.msk.bf16.vlgmr.msra.gmra.mrb[56].mxu0 %vm194_vm7, %v5158_v8 }
 0x9f2   :  { %4164 = vmatpush3.bf16.msra.mxu1 %v4430_v14  ;;  %4212 = vmatpush3.bf16.msra.mxu0 %v4431_v50 }
 0x9f3   :  { %4165 = vmatprep.subr.bf16.mxu1 %v4570_v10  ;;  %4213 = vmatprep.subr.bf16.mxu0 %v4570_v10 }
 0x9f4   :  { %4167 = vmatprep.mubr.msk.bf16.mxu1 %vm4572_vm8, %v4570_v10  ;;  %4215 = vmatprep.mubr.msk.bf16.mxu0 %vm4572_vm8, %v4570_v10 }
 0x9f6   :  { %4166 = vmatpush3.bf16.msra.mxu1 %v4432_v35  ;;  %4214 = vmatpush3.bf16.msra.mxu0 %v4433_v55 }
 0x9f7   :  { %4171 = vmatprep.subr.bf16.mxu1 %v4570_v10  ;;  %4227 = vmatprep.subr.bf16.mxu0 %v4570_v10 }
 0x9f9   :  { %4168 = vmatmul.mubr.msk.bf16.vlgmr.msra.gmra.mrb[64].mxu1 %vm194_vm7, %v5158_v8  ;;  %4216 = vmatmul.mubr.msk.bf16.vlgmr.msra.gmra.mrb[60].mxu0 %vm194_vm7, %v5158_v8 }
 0x9fa   :  { %4172 = vmatpush3.bf16.msra.mxu1 %v4434_v16  ;;  %4228 = vmatpush3.bf16.msra.mxu0 %v4435_v18 }
 0x9fb   :  { %4173 = vmatprep.subr.bf16.mxu1 %v4570_v10  ;;  %4229 = vmatprep.subr.bf16.mxu0 %v4570_v10 }
 0x9fc   :  { %4175 = vmatprep.mubr.msk.bf16.mxu1 %vm4572_vm8, %v4570_v10  ;;  %4231 = vmatprep.mubr.msk.bf16.mxu0 %vm4572_vm8, %v4570_v10 }
 0x9fe   :  { %4174 = vmatpush3.bf16.msra.mxu1 %v4436_v19  ;;  %4230 = vmatpush3.bf16.msra.mxu0 %v4437_v22 }
 0x9ff   :  { %4187 = vmatprep.subr.bf16.mxu1 %v4570_v10  ;;  %4243 = vmatprep.subr.bf16.mxu0 %v4570_v10 }
 0xa01   :  { %4176 = vmatmul.mubr.msk.bf16.vlgmr.msra.gmra.mrb[68].mxu1 %vm194_vm7, %v5158_v8  ;;  %4232 = vmatmul.mubr.msk.bf16.vlgmr.msra.gmra.mrb[64].mxu0 %vm194_vm7, %v5158_v8 }
 0xa02   :  { %4188 = vmatpush3.bf16.msra.mxu1 %v4438_v24  ;;  %4191 = vmatprep.mubr.msk.bf16.mxu1 %vm4572_vm8, %v4570_v10 }
 0xa03   :  { %4189 = vmatprep.subr.bf16.mxu1 %v4570_v10  ;;  %4245 = vmatprep.mubr.msk.bf16.mxu0 %vm4572_vm8, %v4570_v10 }
 0xa06   :  { %4190 = vmatpush3.bf16.msra.mxu1 %v4439_v25 }
 0xa07   :  { %4203 = vmatprep.subr.bf16.mxu1 %v4570_v10 }
 0xa09   :  { %4192 = vmatmul.mubr.msk.bf16.vlgmr.msra.gmra.mrb[72].mxu1 %vm194_vm7, %v5158_v8 }
 0xa0a   :  { %4204 = vmatpush3.bf16.msra.mxu1 %v4440_v17  ;;  %4207 = vmatprep.mubr.msk.bf16.mxu1 %vm4572_vm8, %v4570_v10 }
 0xa0b   :  { %4205 = vmatprep.subr.bf16.mxu1 %v4570_v10 }
 0xa0e   :  { %4206 = vmatpush3.bf16.msra.mxu1 %v4441_v26 }
 0xa0f   :  { %4219 = vmatprep.subr.bf16.mxu1 %v4570_v10 }
 0xa11   :  { %4208 = vmatmul.mubr.msk.bf16.vlgmr.msra.gmra.mrb[76].mxu1 %vm194_vm7, %v5158_v8 }
 0xa12   :  { %4220 = vmatpush3.bf16.msra.mxu1 %v4442_v9  ;;  %4223 = vmatprep.mubr.msk.bf16.mxu1 %vm4572_vm8, %v4570_v10 }
 0xa13   :  { %4221 = vmatprep.subr.bf16.mxu1 %v4570_v10 }
 0xa16   :  { %4222 = vmatpush3.bf16.msra.mxu1 %v4443_v12 }
 0xa17   :  { %4235 = vmatprep.subr.bf16.mxu1 %v4570_v10 }
 0xa19   :  { %4224 = vmatmul.mubr.msk.bf16.vlgmr.msra.gmra.mrb[80].mxu1 %vm194_vm7, %v5158_v8 }
 0xa1a   :  { %4236 = vmatpush3.bf16.msra.mxu1 %v4444_v27  ;;  %4239 = vmatprep.mubr.msk.bf16.mxu1 %vm4572_vm8, %v4570_v10 }
 0xa1b   :  { %4237 = vmatprep.subr.bf16.mxu1 %v4570_v10 }
 0xa1e   :  { %4238 = vmatpush3.bf16.msra.mxu1 %v4445_v28 }
 0xa1f   :  { %4249 = vmatprep.subr.bf16.mxu1 %v4570_v10 }
 0xa21   :  { %4240 = vmatmul.mubr.msk.bf16.vlgmr.msra.gmra.mrb[84].mxu1 %vm194_vm7, %v5158_v8 }
 0xa22   :  { %4251 = vmatprep.mubr.msk.bf16.mxu1 %vm4572_vm8, %v4570_v10 }
 0xabc   :  { %v1976_v29 = vpop.f32.mrb[56].mxu1  ;;  %v2188_v30 = vpop.f32.mrb[52].mxu0 }
 0xabd   :  { %v4153_v31 = vpop.f32.mrb[57].mxu1  ;;  %v4185_v32 = vpop.f32.mrb[53].mxu0 }
 0xabe   :  { %v1979_v36 = vpop.f32.mrb[58].mxu1  ;;  %v2191_v37 = vpop.f32.mrb[54].mxu0 }
 0xabf   :  { %v2566_v38 = vpack.c.bf16 %v1979_v36, %v1976_v29  ;;  %v2570_v39 = vpack.c.bf16 %v2191_v37, %v2188_v30  ;;  %v4154_v40 = vpop.f32.mrb[59].mxu1  ;;  %v4186_v41 = vpop.f32.mrb[55].mxu0 }
 0xac1   :  { %v2582_v42 = vsel %vm938_vm9, %v2570_v39, 0 }
 0xac2   :  { %4244 = vmatpush3.bf16.xpose.msra.mxu0 %v2582_v42 }
 0xac3   :  { %4255 = vmatprep.subr.bf16.mxu0 %v4570_v10 }
 0xac4   :  { %v2029_v45 = vpop.f32.mrb[60].mxu1  ;;  %v2294_v46 = vpop.f32.mrb[56].mxu0 }
 0xac5   :  { %v4161_v51 = vpop.f32.mrb[61].mxu1  ;;  %v4201_v52 = vpop.f32.mrb[57].mxu0 }
 0xac6   :  { %v2032_v53 = vpop.f32.mrb[62].mxu1  ;;  %v2297_v54 = vpop.f32.mrb[58].mxu0 }
 0xac7   :  { %v2567_v56 = vpack.c.bf16 %v2032_v53, %v2029_v45  ;;  %v2572_v57 = vpack.c.bf16 %v2297_v54, %v2294_v46  ;;  %v4162_v58 = vpop.f32.mrb[63].mxu1  ;;  %v4202_v59 = vpop.f32.mrb[59].mxu0 }
 0xac9   :  { %v2676_v0 = vsel %vm938_vm9, %v2572_v57, 0  ;;  %4246 = vmatmul.mubr.msk.bf16.vlgmr.msra.gmra.mrb[68].mxu0 %vm938_vm9, %v2566_v38 }
 0xaca   :  { %4256 = vmatpush3.bf16.xpose.msra.mxu0 %v2676_v0  ;;  %4257 = vmatprep.mubr.msk.bf16.mxu0 %vm4572_vm8, %v4570_v10 }
 0xacb   :  { %4267 = vmatprep.subr.bf16.mxu0 %v4570_v10 }
 0xacc   :  { %v2082_v1 = vpop.f32.mrb[64].mxu1  ;;  %v2400_v60 = vpop.f32.mrb[60].mxu0 }
 0xacd   :  { %v4169_v62 = vpop.f32.mrb[65].mxu1  ;;  %v4217_v63 = vpop.f32.mrb[61].mxu0 }
 0xace   :  { %v2085_v2 = vpop.f32.mrb[66].mxu1  ;;  %v2403_v3 = vpop.f32.mrb[62].mxu0 }
 0xacf   :  { %v2568_v43 = vpack.c.bf16 %v2085_v2, %v2082_v1  ;;  %v2574_v47 = vpack.c.bf16 %v2403_v3, %v2400_v60  ;;  %v4170_v49 = vpop.f32.mrb[67].mxu1  ;;  %v4218_v4 = vpop.f32.mrb[63].mxu0 }
 0xad1   :  { %4258 = vmatmul.mubr.msk.bf16.vlgmr.msra.gmra.mrb[72].mxu0 %vm938_vm9, %v2568_v43 }
 0xad2   :  { %4268 = vmatpush3.bf16.msra.mxu0 %v2574_v47  ;;  %4269 = vmatprep.mubr.msk.bf16.mxu0 %vm4572_vm8, %v4570_v10 }
 0xad3   :  { %4279 = vmatprep.subr.bf16.mxu0 %v4570_v10 }
 0xad4   :  { %v2135_v6 = vpop.f32.mrb[68].mxu1  ;;  %v5293_v8 = vpop.f32.mrb[64].mxu0 }
 0xad5   :  { %v4177_v11 = vpop.f32.mrb[69].mxu1  ;;  %v4233_v13 = vpop.f32.mrb[65].mxu0 }
 0xad6   :  { %v2138_v14 = vpop.f32.mrb[70].mxu1  ;;  %v5295_v50 = vpop.f32.mrb[66].mxu0 }
 0xad7   :  { %v2569_v35 = vpack.c.bf16 %v2138_v14, %v2135_v6  ;;  %v2576_v55 = vpack.c.bf16 %v5295_v50, %v5293_v8  ;;  %v4178_v16 = vpop.f32.mrb[71].mxu1  ;;  %v4234_v18 = vpop.f32.mrb[67].mxu0 }
 0xadc   :  { %v2241_v19 = vpop.f32.mrb[72].mxu1 }
 0xadd   :  { %v4193_v22 = vpop.f32.mrb[73].mxu1 }
 0xade   :  { %v2244_v24 = vpop.f32.mrb[74].mxu1 }
 0xadf   :  { %v2571_v25 = vpack.c.bf16 %v2244_v24, %v2241_v19  ;;  %v4194_v17 = vpop.f32.mrb[75].mxu1 }
 0xae1   :  { %v2629_v26 = vsel %vm938_vm9, %v2571_v25, 0 }
 0xae2   :  { %4250 = vmatpush3.bf16.xpose.msra.mxu1 %v2629_v26 }
 0xae3   :  { %4261 = vmatprep.subr.bf16.mxu1 %v4570_v10 }
 0xae4   :  { %v2347_v9 = vpop.f32.mrb[76].mxu1 }
 0xae5   :  { %v4209_v12 = vpop.f32.mrb[77].mxu1 }
 0xae6   :  { %v2350_v27 = vpop.f32.mrb[78].mxu1 }
 0xae7   :  { %v2573_v28 = vpack.c.bf16 %v2350_v27, %v2347_v9  ;;  %v4210_v29 = vpop.f32.mrb[79].mxu1 }
 0xae9   :  { %v2723_v30 = vsel %vm938_vm9, %v2573_v28, 0  ;;  %4252 = vmatmul.mubr.msk.bf16.vlgmr.msra.gmra.mrb[88].mxu1 %vm938_vm9, %v2567_v56 }
 0xaea   :  { %4262 = vmatpush3.bf16.xpose.msra.mxu1 %v2723_v30  ;;  %4263 = vmatprep.mubr.msk.bf16.mxu1 %vm4572_vm8, %v4570_v10 }
 0xaeb   :  { %4273 = vmatprep.subr.bf16.mxu1 %v4570_v10 }
 0xaec   :  { %v2453_v31 = vpop.f32.mrb[80].mxu1 }
 0xaed   :  { %v4225_v32 = vpop.f32.mrb[81].mxu1 }
 0xaee   :  { %v2456_v36 = vpop.f32.mrb[82].mxu1 }
 0xaef   :  { %v2575_v37 = vpack.c.bf16 %v2456_v36, %v2453_v31  ;;  %v4226_v38 = vpop.f32.mrb[83].mxu1 }
 0xaf1   :  { %4264 = vmatmul.mubr.msk.bf16.vlgmr.msra.gmra.mrb[92].mxu1 %vm938_vm9, %v2569_v35 }
 0xaf2   :  { %4274 = vmatpush3.bf16.msra.mxu1 %v2575_v37  ;;  %4275 = vmatprep.mubr.msk.bf16.mxu1 %vm4572_vm8, %v4570_v10 }
 0xaf3   :  { %4285 = vmatprep.subr.bf16.mxu1 %v4570_v10 }
 0xaf4   :  { %v5310_v39 = vpop.f32.mrb[84].mxu1 }
 0xaf5   :  { %v4241_v40 = vpop.f32.mrb[85].mxu1 }
 0xaf6   :  { %v5312_v41 = vpop.f32.mrb[86].mxu1 }
 0xaf7   :  { %v2577_v42 = vpack.c.bf16 %v5312_v41, %v5310_v39  ;;  %v4242_v45 = vpop.f32.mrb[87].mxu1  ;;  %v3762_v39 = vld [vmem:[%s5520_s5 + $0x10] sm:$0xf] }
 0xaf8   :  { %v3047_v41 = vsel %vm1406_vm0, %v3762_v39, 0 }
 0xb9c   :  { %v2618_v46 = vpop.f32.mrb[68].mxu0 }
 0xb9d   :  { %v2619_v51 = vadd.f32 %v2618_v46, %v4941_v5  ;;  %v4247_v52 = vpop.f32.mrb[69].mxu0 }
 0xb9e   :  { %v2621_v53 = vpop.f32.mrb[70].mxu0 }
 0xb9f   :  { %v2622_v54 = vadd.f32 %v2621_v53, %v4943_v7  ;;  %v4248_v56 = vpop.f32.mrb[71].mxu0  ;;  %v2766_v57 = vsel %vm98_vm3, %v2619_v51, -inf }
 0xba0   :  { %2767 = vmax.xlane.f32.xlu1 %v2766_v57 }
 0xba1   :  { %v2769_v58 = vsel %vm98_vm3, %v2622_v54, -inf }
 0xba2   :  { %2770 = vmax.xlane.f32.xlu0 %v2769_v58 }
 0xba4   :  { %v2712_v59 = vpop.f32.mrb[72].mxu0 }
 0xba5   :  { %v4259_v0 = vpop.f32.mrb[73].mxu0  ;;  %v2713_v43 = vadd.f32 %v2712_v59, %v4941_v5 }
 0xba6   :  { %v2715_v1 = vpop.f32.mrb[74].mxu0 }
 0xba7   :  { %v4260_v60 = vpop.f32.mrb[75].mxu0  ;;  %v2716_v6 = vadd.f32 %v2715_v1, %v4943_v7  ;;  %v2778_v13 = vsel %vm98_vm3, %v2713_v43, -inf }
 0xba9   :  { %v2781_v18 = vsel %vm98_vm3, %v2716_v6, -inf }
 0xbbc   :  { %v2665_v62 = vpop.f32.mrb[88].mxu1 }
 0xbbd   :  { %v2666_v63 = vadd.f32 %v2665_v62, %v4941_v5  ;;  %v4253_v2 = vpop.f32.mrb[89].mxu1 }
 0xbbe   :  { %v2668_v3 = vpop.f32.mrb[90].mxu1 }
 0xbbf   :  { %v2669_v47 = vadd.f32 %v2668_v3, %v4943_v7  ;;  %v4254_v49 = vpop.f32.mrb[91].mxu1  ;;  %v2772_v4 = vsel %vm98_vm3, %v2666_v63, -inf }
 0xbc0   :  { %2773 = vmax.xlane.f32.xlu1 %v2772_v4 }
 0xbc1   :  { %v2775_v11 = vsel %vm98_vm3, %v2669_v47, -inf }
 0xbc2   :  { %2776 = vmax.xlane.f32.xlu0 %v2775_v11 }
 0xbc4   :  { %v2759_v14 = vpop.f32.mrb[92].mxu1  ;;  %2779 = vmax.xlane.f32.xlu1 %v2778_v13 }
 0xbc5   :  { %v2760_v35 = vadd.f32 %v2759_v14, %v4941_v5  ;;  %v4265_v16 = vpop.f32.mrb[93].mxu1 }
 0xbc6   :  { %v2762_v19 = vpop.f32.mrb[94].mxu1  ;;  %2782 = vmax.xlane.f32.xlu0 %v2781_v18 }
 0xbc7   :  { %v2763_v22 = vadd.f32 %v2762_v19, %v4943_v7  ;;  %v4266_v24 = vpop.f32.mrb[95].mxu1  ;;  %v2784_v25 = vsel %vm98_vm3, %v2760_v35, -inf }
 0xbc8   :  { %2785 = vmax.xlane.f32.xlu1 %v2784_v25 }
 0xbc9   :  { %v2787_v17 = vsel %vm98_vm3, %v2763_v22, -inf }
 0xbca   :  { %2788 = vmax.xlane.f32.xlu0 %v2787_v17 }
 0xc2d   :  { %v2768_v26 = vpop.xlane.xlu1 %2767 }
 0xc2e   :  { %v2790_v9 = vsub.f32 %v2619_v51, %v2768_v26 }
 0xc2f   :  { %v2771_v12 = vpop.xlane.xlu0 %2770 }
 0xc30   :  { %v2798_v27 = vmul.f32 1.442695, %v2790_v9  ;;  %v2791_v28 = vsub.f32 %v2622_v54, %v2771_v12 }
 0xc32   :  { %4502 = vpow2.f32 %v2798_v27  ;;  %v2800_v5 = vmul.f32 1.442695, %v2791_v28 }
 0xc34   :  { %4504 = vpow2.f32 %v2800_v5 }
 0xc3c   :  { %v4503_v29 = vpop.eup %4502 }
 0xc3d   :  { %v2814_v30 = vsel %vm98_vm3, %v4503_v29, 0.0 }
 0xc3e   :  { %v4505_v31 = vpop.eup %4504  ;;  %2815 = vadd.xlane.f32.xlu1 %v2814_v30 }
 0xc3f   :  { %v2817_v7 = vsel %vm98_vm3, %v4505_v31, 0.0 }
 0xc40   :  { %2818 = vadd.xlane.f32.xlu0 %v2817_v7 }
 0xc4d   :  { %v2774_v32 = vpop.xlane.xlu1 %2773 }
 0xc4e   :  { %v2792_v36 = vsub.f32 %v2666_v63, %v2774_v32 }
 0xc4f   :  { %v2777_v37 = vpop.xlane.xlu0 %2776 }
 0xc50   :  { %v2802_v38 = vmul.f32 1.442695, %v2792_v36  ;;  %v2793_v40 = vsub.f32 %v2669_v47, %v2777_v37 }
 0xc51   :  { %v2780_v45 = vpop.xlane.xlu1 %2779 }
 0xc52   :  { %4506 = vpow2.f32 %v2802_v38  ;;  %v2804_v46 = vmul.f32 1.442695, %v2793_v40  ;;  %v2794_v51 = vsub.f32 %v2713_v43, %v2780_v45 }
 0xc53   :  { %v2783_v52 = vpop.xlane.xlu0 %2782 }
 0xc54   :  { %4508 = vpow2.f32 %v2804_v46  ;;  %v2806_v53 = vmul.f32 1.442695, %v2794_v51  ;;  %v2795_v54 = vsub.f32 %v2716_v6, %v2783_v52 }
 0xc55   :  { %v2786_v56 = vpop.xlane.xlu1 %2785 }
 0xc56   :  { %4510 = vpow2.f32 %v2806_v53  ;;  %v2808_v57 = vmul.f32 1.442695, %v2795_v54  ;;  %v2796_v58 = vsub.f32 %v2760_v35, %v2786_v56  ;;  %v3764_v53 = vld [vmem:[%s5520_s5 + $0x18] sm:$0xf] }
 0xc57   :  { %v2789_v59 = vpop.xlane.xlu0 %2788 }
 0xc58   :  { %4512 = vpow2.f32 %v2808_v57  ;;  %v2810_v0 = vmul.f32 1.442695, %v2796_v58  ;;  %v2797_v1 = vsub.f32 %v2763_v22, %v2789_v59  ;;  %v3141_v59 = vsel %vm1406_vm0, %v3764_v53, 0 }
 0xc5a   :  { %4514 = vpow2.f32 %v2810_v0  ;;  %v2812_v60 = vmul.f32 1.442695, %v2797_v1  ;;  %v3765_v1 = vld [vmem:[%s5520_s5 + $0x1c] sm:$0xf] }
 0xc5c   :  { %v4507_v62 = vpop.eup %4506  ;;  %4516 = vpow2.f32 %v2812_v60 }
 0xc5d   :  { %v2820_v63 = vsel %vm98_vm3, %v4507_v62, 0.0 }
 0xc5e   :  { %v4509_v2 = vpop.eup %4508  ;;  %2821 = vadd.xlane.f32.xlu1 %v2820_v63 }
 0xc5f   :  { %v2823_v3 = vsel %vm98_vm3, %v4509_v2, 0.0 }
 0xc60   :  { %v4511_v43 = vpop.eup %4510  ;;  %2824 = vadd.xlane.f32.xlu0 %v2823_v3  ;;  %v3188_v3 = vsel %vm1406_vm0, %v3765_v1, 0 }
 0xc61   :  { %v2826_v47 = vsel %vm98_vm3, %v4511_v43, 0.0 }
 0xc62   :  { %v4513_v49 = vpop.eup %4512  ;;  %2827 = vadd.xlane.f32.xlu1 %v2826_v47 }
 0xc63   :  { %v2829_v4 = vsel %vm98_vm3, %v4513_v49, 0.0 }
 0xc64   :  { %v4515_v6 = vpop.eup %4514  ;;  %2830 = vadd.xlane.f32.xlu0 %v2829_v4 }
 0xc65   :  { %v2832_v11 = vsel %vm98_vm3, %v4515_v6, 0.0 }
 0xc66   :  { %v4517_v13 = vpop.eup %4516  ;;  %2833 = vadd.xlane.f32.xlu1 %v2832_v11 }
 0xc67   :  { %v2835_v14 = vsel %vm98_vm3, %v4517_v13, 0.0 }
 0xc68   :  { %2836 = vadd.xlane.f32.xlu0 %v2835_v14 }
 0xccb   :  { %v2816_v35 = vpop.xlane.xlu1 %2815 }
 0xccc   :  { %4518 = vrcp.f32 %v2816_v35 }
 0xccd   :  { %v2819_v16 = vpop.xlane.xlu0 %2818 }
 0xcce   :  { %4520 = vrcp.f32 %v2819_v16 }
 0xcd6   :  { %v4519_v18 = vpop.eup %4518 }
 0xcd7   :  { %v2846_v22 = vmul.f32 %v4519_v18, %v4503_v29 }
 0xcd8   :  { %v4521_v19 = vpop.eup %4520 }
 0xcd9   :  { %v2847_v24 = vmul.f32 %v4521_v19, %v4505_v31 }
 0xcdb   :  { %v2854_v25 = vpack.c.bf16 %v2847_v24, %v2846_v22 }
 0xcdd   :  { %4270 = vmatmul.mubr.msk.bf16.vlgmr.msra.gmra.mrb[76].mxu0 %vm98_vm3, %v2854_v25 }
 0xcde   :  { %4280 = vmatpush3.bf16.msra.mxu0 %v2576_v55  ;;  %4281 = vmatprep.mubr.msk.bf16.mxu0 %vm4572_vm8, %v4570_v10 }
 0xcdf   :  { %4291 = vmatprep.subr.bf16.mxu0 %v4570_v10 }
 0xceb   :  { %v2822_v17 = vpop.xlane.xlu1 %2821 }
 0xcec   :  { %4522 = vrcp.f32 %v2822_v17 }
 0xced   :  { %v2825_v26 = vpop.xlane.xlu0 %2824 }
 0xcee   :  { %4524 = vrcp.f32 %v2825_v26 }
 0xcef   :  { %v2828_v9 = vpop.xlane.xlu1 %2827 }
 0xcf0   :  { %4526 = vrcp.f32 %v2828_v9 }
 0xcf1   :  { %v2831_v12 = vpop.xlane.xlu0 %2830 }
 0xcf2   :  { %4528 = vrcp.f32 %v2831_v12 }
 0xcf3   :  { %v2834_v27 = vpop.xlane.xlu1 %2833 }
 0xcf4   :  { %4530 = vrcp.f32 %v2834_v27 }
 0xcf5   :  { %v2837_v28 = vpop.xlane.xlu0 %2836 }
 0xcf6   :  { %v4523_v5 = vpop.eup %4522  ;;  %4532 = vrcp.f32 %v2837_v28 }
 0xcf7   :  { %v2848_v50 = vmul.f32 %v4523_v5, %v4507_v62 }
 0xcf8   :  { %v4525_v8 = vpop.eup %4524 }
 0xcf9   :  { %v2849_v55 = vmul.f32 %v4525_v8, %v4509_v2 }
 0xcfa   :  { %v4527_v29 = vpop.eup %4526 }
 0xcfb   :  { %v2855_v30 = vpack.c.bf16 %v2849_v55, %v2848_v50  ;;  %v2850_v7 = vmul.f32 %v4527_v29, %v4511_v43 }
 0xcfc   :  { %v4529_v31 = vpop.eup %4528 }
 0xcfd   :  { %v2851_v32 = vmul.f32 %v4529_v31, %v4513_v49  ;;  %4276 = vmatmul.mubr.msk.bf16.vlgmr.msra.gmra.mrb[96].mxu1 %vm98_vm3, %v2855_v30 }
 0xcfe   :  { %v4531_v36 = vpop.eup %4530  ;;  %4286 = vmatpush3.bf16.msra.mxu1 %v2577_v42  ;;  %4287 = vmatprep.mubr.msk.bf16.mxu1 %vm4572_vm8, %v4570_v10  ;;  %v3763_v42 = vld [vmem:[%s5520_s5 + $0x14] sm:$0xf] }
 0xcff   :  { %v2856_v37 = vpack.c.bf16 %v2851_v32, %v2850_v7  ;;  %4297 = vmatprep.subr.bf16.mxu1 %v4570_v10  ;;  %v2852_v40 = vmul.f32 %v4531_v36, %v4515_v6  ;;  %v3094_v51 = vsel %vm1406_vm0, %v3763_v42, 0  ;;  %v5400_v32 = vld [vmem:[%s5517_s2 + $0x8] sm:$0x3f] }
 0xd00   :  { %v4533_v38 = vpop.eup %4532 }
 0xd01   :  { %v2853_v45 = vmul.f32 %v4533_v38, %v4517_v13  ;;  %4282 = vmatmul.mubr.msk.bf16.vlgmr.msra.gmra.mrb[80].mxu0 %vm98_vm3, %v2856_v37 }
 0xd02   :  { %4293 = vmatprep.mubr.msk.bf16.mxu0 %vm4572_vm8, %v4570_v10  ;;  %4292 = vmatpush3.bf16.msra.mxu0 %v3047_v41  ;;  %v3250_v41 = vrot.slane %v5400_v32, %v4742_v15 }
 0xd03   :  { %v2857_v46 = vpack.c.bf16 %v2853_v45, %v2852_v40  ;;  %4303 = vmatprep.subr.bf16.mxu0 %v4570_v10 }
 0xd05   :  { %4288 = vmatmul.mubr.msk.bf16.vlgmr.msra.gmra.mrb[100].mxu1 %vm98_vm3, %v2857_v46 }
 0xd06   :  { %4299 = vmatprep.mubr.msk.bf16.mxu1 %vm4572_vm8, %v4570_v10  ;;  %4298 = vmatpush3.bf16.msra.mxu1 %v3094_v51 }
 0xd07   :  { %4309 = vmatprep.subr.bf16.mxu1 %v4570_v10 }
 0xdb0   :  { %v2895_v52 = vpop.f32.mrb[76].mxu0 }
 0xdb1   :  { %v4271_v54 = vpop.f32.mrb[77].mxu0 }
 0xdb2   :  { %v2898_v56 = vpop.f32.mrb[78].mxu0 }
 0xdb3   :  { %v3039_v57 = vpack.c.bf16 %v2898_v56, %v2895_v52  ;;  %v4272_v58 = vpop.f32.mrb[79].mxu0 }
 0xdb5   :  { %4294 = vmatmul.mubr.msk.bf16.vlgmr.msra.gmra.mrb[84].mxu0 %vm938_vm9, %v3039_v57 }
 0xdb6   :  { %4304 = vmatpush3.bf16.msra.mxu0 %v3141_v59  ;;  %4305 = vmatprep.mubr.msk.bf16.mxu0 %vm4572_vm8, %v4570_v10 }
 0xdb7   :  { %4315 = vmatprep.subr.bf16.mxu0 %v4570_v10 }
 0xdd0   :  { %v2939_v0 = vpop.f32.mrb[96].mxu1 }
 0xdd1   :  { %v4277_v60 = vpop.f32.mrb[97].mxu1 }
 0xdd2   :  { %v2942_v62 = vpop.f32.mrb[98].mxu1  ;;  %v4446_v60 = vld [vmem:[%s5521_s6 + $0x10] sm:$0xff]  }
 0xdd3   :  { %v3040_v63 = vpack.c.bf16 %v2942_v62, %v2939_v0  ;;  %v4278_v2 = vpop.f32.mrb[99].mxu1  ;;  %v4447_v62 = vld [vmem:[%s5521_s6 + $0x18] sm:$0xff]  }
 0xdd4   :  { %v2983_v43 = vpop.f32.mrb[80].mxu0  ;;  %v4449_v2 = vld [vmem:[%s5522_s7 + $0x48] sm:$0xff]  }
 0xdd5   :  { %v4283_v47 = vpop.f32.mrb[81].mxu0  ;;  %4300 = vmatmul.mubr.msk.bf16.vlgmr.msra.gmra.mrb[104].mxu1 %vm938_vm9, %v3040_v63  ;;  %v4448_v63 = vld [vmem:[%s5522_s7 + $0x40] sm:$0xff]  }
 0xdd6   :  { %v2986_v49 = vpop.f32.mrb[82].mxu0  ;;  %4310 = vmatpush3.bf16.msra.mxu1 %v3188_v3  ;;  %4311 = vmatprep.mubr.msk.bf16.mxu1 %vm4572_vm8, %v4570_v10  ;;  %v4450_v3 = vld [vmem:[%s5522_s7 + $0x50] sm:$0xff]   ;;  %v4452_v47 = vld [vmem:[%s5522_s7 + $0x60] sm:$0xff]  }
 0xdd7   :  { %v3041_v4 = vpack.c.bf16 %v2986_v49, %v2983_v43  ;;  %v4284_v6 = vpop.f32.mrb[83].mxu0  ;;  %4323 = vmatprep.subr.bf16.mxu1 %v4570_v10  ;;  %v4451_v43 = vld [vmem:[%s5522_s7 + $0x58] sm:$0xff]   ;;  %v4453_v49 = vld [vmem:[%s5522_s7 + $0x68] sm:$0xff]  }
 0xdd8   :  { %v3027_v11 = vpop.f32.mrb[100].mxu1 }
 0xdd9   :  { %v4289_v13 = vpop.f32.mrb[101].mxu1  ;;  %4306 = vmatmul.mubr.msk.bf16.vlgmr.msra.gmra.mrb[88].mxu0 %vm938_vm9, %v3041_v4 }
 0xdda   :  { %v3030_v14 = vpop.f32.mrb[102].mxu1  ;;  %4319 = vmatprep.mubr.msk.bf16.mxu0 %vm4572_vm8, %v4570_v10  ;;  %4316 = vmatpush3.bf16.msra.mxu0 %v4446_v60 }
 0xddb   :  { %v3042_v35 = vpack.c.bf16 %v3030_v14, %v3027_v11  ;;  %v4290_v16 = vpop.f32.mrb[103].mxu1  ;;  %4317 = vmatprep.subr.bf16.mxu0 %v4570_v10 }
 0xddd   :  { %4312 = vmatmul.mubr.msk.bf16.vlgmr.msra.gmra.mrb[108].mxu1 %vm938_vm9, %v3042_v35 }
 0xdde   :  { %4339 = vmatprep.mubr.msk.bf16.mxu1 %vm4572_vm8, %v4570_v10  ;;  %4318 = vmatpush3.bf16.msra.mxu0 %v4447_v62 }
 0xddf   :  { %4343 = vmatprep.subr.bf16.mxu0 %v4570_v10  ;;  %4324 = vmatpush3.bf16.msra.mxu1 %v4448_v63 }
 0xde0   :  { %4325 = vmatprep.subr.bf16.mxu1 %v4570_v10 }
 0xde3   :  { %4326 = vmatpush3.bf16.msra.mxu1 %v4449_v2 }
 0xde4   :  { %4327 = vmatprep.subr.bf16.mxu1 %v4570_v10 }
 0xde7   :  { %4328 = vmatpush3.bf16.msra.mxu1 %v4450_v3 }
 0xde8   :  { %4329 = vmatprep.subr.bf16.mxu1 %v4570_v10 }
 0xdeb   :  { %4330 = vmatpush3.bf16.msra.mxu1 %v4451_v43 }
 0xdec   :  { %4331 = vmatprep.subr.bf16.mxu1 %v4570_v10 }
 0xdef   :  { %4332 = vmatpush3.bf16.msra.mxu1 %v4452_v47 }
 0xdf0   :  { %4333 = vmatprep.subr.bf16.mxu1 %v4570_v10 }
 0xdf3   :  { %4334 = vmatpush3.bf16.msra.mxu1 %v4453_v49 }
 0xdf4   :  { %4335 = vmatprep.subr.bf16.mxu1 %v4570_v10 }
 0xe88   :  { %v3083_v18 = vpop.f32.mrb[84].mxu0 }
 0xe89   :  { %v4295_v19 = vpop.f32.mrb[85].mxu0  ;;  %v3231_v17 = vsel %vm194_vm7, %v3083_v18, 0.0 }
 0xe8a   :  { %v3086_v22 = vpop.f32.mrb[86].mxu0 }
 0xe8b   :  { %v4296_v24 = vpop.f32.mrb[87].mxu0  ;;  %v3238_v28 = vsel %vm194_vm7, %v3086_v22, 0.0 }
 0xea8   :  { %v3130_v25 = vpop.f32.mrb[104].mxu1 }
 0xea9   :  { %v3232_v26 = vsel %vm194_vm7, %v3130_v25, 0.0  ;;  %v4301_v9 = vpop.f32.mrb[105].mxu1 }
 0xeaa   :  { %v3233_v12 = vadd.f32 %v3232_v26, %v3231_v17  ;;  %v3133_v27 = vpop.f32.mrb[106].mxu1 }
 0xeab   :  { %v3239_v5 = vsel %vm194_vm7, %v3133_v27, 0.0  ;;  %v4302_v8 = vpop.f32.mrb[107].mxu1 }
 0xeac   :  { %v3240_v50 = vadd.f32 %v3239_v5, %v3238_v28  ;;  %v3177_v55 = vpop.f32.mrb[88].mxu0 }
 0xead   :  { %v3234_v29 = vsel %vm194_vm7, %v3177_v55, 0.0  ;;  %v4307_v30 = vpop.f32.mrb[89].mxu0 }
 0xeae   :  { %v3235_v31 = vadd.f32 %v3234_v29, %v3233_v12  ;;  %v3180_v7 = vpop.f32.mrb[90].mxu0  ;;  %v3286_v12 = vrot.slane %v5400_v32, %v4753_v20  ;;  %v3292_v29 = vrot.slane %v5400_v32, %v5027_v61 }
 0xeaf   :  { %v3241_v36 = vsel %vm194_vm7, %v3180_v7, 0.0  ;;  %v4308_v37 = vpop.f32.mrb[91].mxu0 }
 0xeb0   :  { %v3242_v38 = vadd.f32 %v3241_v36, %v3240_v50  ;;  %v3224_v40 = vpop.f32.mrb[108].mxu1  ;;  %v4454_v37 = vld [vmem:[%s5522_s7 + $0x70] sm:$0xff]  }
 0xeb1   :  { %v3236_v45 = vsel %vm194_vm7, %v3224_v40, 0.0  ;;  %v4313_v46 = vpop.f32.mrb[109].mxu1  ;;  %4336 = vmatpush3.bf16.msra.mxu1 %v4454_v37  ;;  %v5474_v40 = vld [vmem:[%s5518_s3] sm:$0x7] }
 0xeb2   :  { %v3237_v39 = vadd.f32 %v3236_v45, %v3235_v31  ;;  %v3227_v42 = vpop.f32.mrb[110].mxu1  ;;  %4337 = vmatprep.subr.bf16.mxu1 %v4570_v10  ;;  %v3304_v45 = vrot.slane %v5474_v40, %v4753_v20 }
 0xeb3   :  { %v3243_v51 = vsel %vm194_vm7, %v3227_v42, 0.0  ;;  %v4314_v52 = vpop.f32.mrb[111].mxu1 }
 0xeb4   :  { %v3245_v53 = vadd.f32 %v3237_v39, %v5114_v21  ;;  %v3244_v54 = vadd.f32 %v3243_v51, %v3242_v38  ;;  %v4455_v38 = vld [vmem:[%s5522_s7 + $0x78] sm:$0xff]  }
 0xeb5   :  { %4338 = vmatpush3.bf16.msra.mxu1 %v4455_v38 }
 0xeb6   :  { %v5408_v56 = vadd.f32 %v3250_v41, %v3245_v53  ;;  %v3246_v57 = vadd.f32 %v3244_v54, %v5117_v23 }
 0xeb8   :  { %v5411_v58 = vadd.f32 %v3250_v41, %v3246_v57  ;;  %v3253_v59 = vsel %vm194_vm7, %v5408_v56, 0.0  ;;  %v3261_v0 = vmul.f32 %v5408_v56, %v5408_v56 }
 0xeb9   :  { %3254 = vadd.xlane.f32.xlu1 %v3253_v59  ;;  %v3384_v59 = vrot.slane %v5400_v32, %v1646_v44 }
 0xeba   :  { %v3256_v15 = vsel %vm194_vm7, %v5411_v58, 0.0  ;;  %v3262_v21 = vmul.f32 %v5411_v58, %v5411_v58  ;;  %v3263_v1 = vsel %vm194_vm7, %v3261_v0, 0.0 }
 0xebb   :  { %3257 = vadd.xlane.f32.xlu0 %v3256_v15 }
 0xebc   :  { %v3266_v23 = vsel %vm194_vm7, %v3262_v21, 0.0 }
 0xebd   :  { %3264 = vadd.xlane.f32.xlu1 %v3263_v1 }
 0xebf   :  { %3267 = vadd.xlane.f32.xlu0 %v3266_v23 }
 0xf46   :  { %v3255_v4 = vpop.xlane.xlu1 %3254 }
 0xf47   :  { %v3259_v6 = vmul.f32 0.03125, %v3255_v4 }
 0xf48   :  { %v3258_v11 = vpop.xlane.xlu0 %3257 }
 0xf49   :  { %v3260_v13 = vmul.f32 0.03125, %v3258_v11  ;;  %v3271_v35 = vmul.f32 %v3259_v6, %v3259_v6  ;;  %v3275_v9 = vsub.f32 %v5408_v56, %v3259_v6 }
 0xf4a   :  { %v3265_v14 = vpop.xlane.xlu1 %3264 }
 0xf4b   :  { %v3269_v16 = vmul.f32 0.03125, %v3265_v14  ;;  %v3272_v19 = vmul.f32 %v3260_v13, %v3260_v13  ;;  %v3276_v28 = vsub.f32 %v5411_v58, %v3260_v13 }
 0xf4c   :  { %v3268_v18 = vpop.xlane.xlu0 %3267 }
 0xf4d   :  { %v3273_v22 = vsub.f32 %v3269_v16, %v3271_v35  ;;  %v3270_v24 = vmul.f32 0.03125, %v3268_v18 }
 0xf4f   :  { %v3277_v25 = vadd.f32 1e-05, %v3273_v22  ;;  %v3274_v17 = vsub.f32 %v3270_v24, %v3272_v19 }
 0xf51   :  { %4534 = vrsqrt.f32 %v3277_v25  ;;  %v3278_v26 = vadd.f32 1e-05, %v3274_v17 }
 0xf53   :  { %4536 = vrsqrt.f32 %v3278_v26 }
 0xf5b   :  { %v4535_v27 = vpop.eup %4534 }
 0xf5c   :  { %v3281_v5 = vmul.f32 %v4535_v27, %v3275_v9 }
 0xf5d   :  { %v4537_v8 = vpop.eup %4536 }
 0xf5e   :  { %v3282_v50 = vmul.f32 %v4537_v8, %v3276_v28  ;;  %v3287_v55 = vmul.f32 %v3286_v12, %v3281_v5  ;;  %v3515_v5 = vrot.slane %v5400_v32, %v1742_v34 }
 0xf60   :  { %v3288_v30 = vmul.f32 %v3286_v12, %v3282_v50  ;;  %v3293_v31 = vadd.f32 %v3292_v29, %v3287_v55 }
 0xf62   :  { %v3294_v7 = vadd.f32 %v3292_v29, %v3288_v30 }
 0xf64   :  { %v3295_v36 = vpack.c.bf16 %v3294_v7, %v3293_v31  ;;  %v3526_v7 = vrot.slane %v5474_v40, %v5027_v61 }
 0xf66   :  { %4320 = vmatmul.mubr.msk.bf16.vlgmr.msra.gmra.mrb[92].mxu0 %vm194_vm7, %v3295_v36 }
 0xf67   :  { %4347 = vmatprep.mubr.msk.bf16.mxu0 %vm4572_vm8, %v4570_v10 }
0x1039   :  { %v3354_v46 = vpop.f32.mrb[92].mxu0 }
0x103a   :  { %v3355_v39 = vadd.f32 %v3354_v46, %v3304_v45  ;;  %v4321_v41 = vpop.f32.mrb[93].mxu0 }
0x103b   :  { %v3357_v42 = vpop.f32.mrb[94].mxu0 }
0x103c   :  { %v3358_v51 = vadd.f32 %v3357_v42, %v3304_v45  ;;  %v4322_v52 = vpop.f32.mrb[95].mxu0  ;;  %v3361_v53 = vmax.f32 %v3355_v39, 0.0 }
0x103e   :  { %v3362_v54 = vmax.f32 %v3358_v51, 0.0 }
0x1040   :  { %v3363_v57 = vpack.c.bf16 %v3362_v54, %v3361_v53 }
0x1042   :  { %4340 = vmatmul.mubr.bf16.vlgmr.msra.gmra.mrb[112].mxu1 %v3363_v57 }
0x1115   :  { %v3467_v0 = vpop.f32.mrb[112].mxu1 }
0x1116   :  { %v3468_v15 = vadd.f32 %v3467_v0, %v3384_v59  ;;  %v4341_v21 = vpop.f32.mrb[113].mxu1 }
0x1117   :  { %v3470_v1 = vpop.f32.mrb[114].mxu1 }
0x1118   :  { %v3474_v20 = vadd.f32 %v3468_v15, %v5408_v56  ;;  %v3471_v23 = vadd.f32 %v3470_v1, %v3384_v59  ;;  %v4342_v60 = vpop.f32.mrb[115].mxu1  ;;  %v4456_v56 = vld [vmem:[%s5523_s8] sm:$0xff]  }
0x1119   :  { %4344 = vmatpush3.bf16.msra.mxu0 %v4456_v56 }
0x111a   :  { %v3475_v62 = vadd.f32 %v3471_v23, %v5411_v58  ;;  %v3476_v63 = vsel %vm194_vm7, %v3474_v20, 0.0  ;;  %v3484_v2 = vmul.f32 %v3474_v20, %v3474_v20  ;;  %v4457_v58 = vld [vmem:[%s5523_s8 + $0x8] sm:$0xff]   ;;  %4345 = vmatprep.subr.bf16.mxu0 %v4570_v10  ;;  %v3509_v10 = vrot.slane %v5400_v32, %v1652_v48  ;;  %s4574_s8 = smov [#allocation2]  }
0x111b   :  { %3477 = vadd.xlane.f32.xlu1 %v3476_v63  ;;  %s3590_s25 = sshll.u32 %s4574_s8, 4  ;;  %s3591_s25 = int_to_ptr.vmem [resolvable:$true] %s3590_s25 }
0x111c   :  { %v3479_v3 = vsel %vm194_vm7, %v3475_v62, 0.0  ;;  %v3485_v43 = vmul.f32 %v3475_v62, %v3475_v62  ;;  %v3486_v44 = vsel %vm194_vm7, %v3484_v2, 0.0  ;;  %s4544_s5 = scalar_lea.vmem %s3591_s25, 256  ;;  %p4549_p1 = scmp.lt.s32.totalorder %s3591_s25, %s3591_s25 }
0x111d   :  { %3480 = vadd.xlane.f32.xlu0 %v3479_v3  ;;  %4346 = vmatpush3.bf16.msra.mxu0 %v4457_v58  ;;  %p4545_p0 = scmp.ne.s32.totalorder %s3591_s25, %s4544_s5  ;;  %p4550_p2 = scmp.lt.s32.totalorder %s4544_s5, %s4544_s5 }
0x111e   :  { %v3489_v47 = vsel %vm194_vm7, %v3485_v43, 0.0 }
0x111f   :  { %3487 = vadd.xlane.f32.xlu1 %v3486_v44  ;;  %p4551_p3 = por %p4550_p2, %p4549_p1 }
0x1121   :  { %3490 = vadd.xlane.f32.xlu0 %v3489_v47  ;;  %p4552_p4 = pnand %p4551_p3, %p4545_p0 }
0x11a8   :  { %v3478_v49 = vpop.xlane.xlu1 %3477 }
0x11a9   :  { %v3482_v4 = vmul.f32 0.03125, %v3478_v49 }
0x11aa   :  { %v3481_v6 = vpop.xlane.xlu0 %3480 }
0x11ab   :  { %v3483_v11 = vmul.f32 0.03125, %v3481_v6  ;;  %v3494_v14 = vmul.f32 %v3482_v4, %v3482_v4  ;;  %v3498_v26 = vsub.f32 %v3474_v20, %v3482_v4 }
0x11ac   :  { %v3488_v13 = vpop.xlane.xlu1 %3487 }
0x11ad   :  { %v3492_v35 = vmul.f32 0.03125, %v3488_v13  ;;  %v3495_v18 = vmul.f32 %v3483_v11, %v3483_v11  ;;  %v3499_v12 = vsub.f32 %v3475_v62, %v3483_v11 }
0x11ae   :  { %v3491_v16 = vpop.xlane.xlu0 %3490 }
0x11af   :  { %v3496_v19 = vsub.f32 %v3492_v35, %v3494_v14  ;;  %v3493_v22 = vmul.f32 0.03125, %v3491_v16 }
0x11b1   :  { %v3500_v24 = vadd.f32 1e-05, %v3496_v19  ;;  %v3497_v25 = vsub.f32 %v3493_v22, %v3495_v18 }
0x11b3   :  { %4538 = vrsqrt.f32 %v3500_v24  ;;  %v3501_v17 = vadd.f32 1e-05, %v3497_v25 }
0x11b5   :  { %4540 = vrsqrt.f32 %v3501_v17 }
0x11bd   :  { %v4539_v9 = vpop.eup %4538 }
0x11be   :  { %v3504_v27 = vmul.f32 %v4539_v9, %v3498_v26 }
0x11bf   :  { %v4541_v28 = vpop.eup %4540 }
0x11c0   :  { %v3510_v8 = vmul.f32 %v3509_v10, %v3504_v27  ;;  %v3505_v50 = vmul.f32 %v4541_v28, %v3499_v12 }
0x11c2   :  { %v3511_v55 = vmul.f32 %v3509_v10, %v3505_v50  ;;  %v3516_v29 = vadd.f32 %v3515_v5, %v3510_v8 }
0x11c4   :  { %v3517_v30 = vadd.f32 %v3515_v5, %v3511_v55 }
0x11c6   :  { %v3518_v31 = vpack.c.bf16 %v3517_v30, %v3516_v29 }
0x11c8   :  { %4348 = vmatmul.mubr.msk.bf16.vlgmr.msra.gmra.mrb[96].mxu0 %vm194_vm7, %v3518_v31 }
0x129b   :  { %v3576_v48 = vpop.f32.mrb[96].mxu0 }
0x129c   :  { %v3577_v36 = vadd.f32 %v3576_v48, %v3526_v7  ;;  %v4349_v37 = vpop.f32.mrb[97].mxu0 }
0x129d   :  { %v3579_v38 = vpop.f32.mrb[98].mxu0 }
0x129e   :  { %3583 = vst [vmem:[#allocation2] sm:$0xff] %v3577_v36  ;;  %v3580_v33 = vadd.f32 %v3579_v38, %v3526_v7  ;;  %v4350_v34 = vpop.f32.mrb[99].mxu0 }
0x12a0   :  { %3584 = vst [vmem:[#allocation2 + $0x8] sm:$0xff] %v3580_v33 }
0x12a1   :  { %4555 = shalt.err (!%p4552_p4)
}
0x12a2   :  { %s4556_s1 = scalar_lea.hbm %s5524_s9, 256 }
0x12a3   :  { %p4557_p5 = scmp.ne.s32.totalorder %s5524_s9, %s4556_s1  ;;  %p4560_p6 = scmp.lt.u32.totalorder %s4556_s1, %s5524_s9 }
0x12a5   :  { %p4562_p7 = pnand %p4560_p6, %p4557_p5 }
0x12a7   :  { %4565 = shalt.err (!%p4562_p7)
}
0x12a8   :  { %s4575_s30 = smov 128   ;;  %s4576_s10 = smov 8  }
0x12a9   :  { %3596 = dma.vmem_to_hbm [thread:$0]  %s3591_s25, 256, %s5524_s9, [#allocation3], %s4575_s30, %s4575_s30, %s4576_s10  }
0x12aa   :  { %4566 = dma.done.wait [#allocation3], 256  }
0x12ab   :  { %4567 = vsyncadd [#allocation3], 4294967040 }
0x12ac   :  { %3600 = vsyncpa [#allocation3], 1 }

</bundles_post_ra>
